<compile_context>
chip_gen: v6e
topology: v6e:2x2x1
jax: 0.10.0
libtpu: 0.0.40
codegen_flags: <defaults>
</compile_context>

<pallas_src>
import functools

import jax
import jax.numpy as jnp
from jax.experimental import pallas as pl
from jax.experimental.pallas import tpu as pltpu


def _round_up(x, m):
    return ((x + m - 1) // m) * m


def _mlp_kernel(x_ref, w1_ref, w2_ref, w3_ref, w4_ref,
                b1_ref, b2_ref, b3_ref, b4_ref, o_ref):
    # Cast x to bf16 in-kernel (VPU work, hidden under the MXU); accumulate in
    # f32 and keep the elementwise path (bias, ReLU, sigmoid) in f32.
    x = x_ref[...].astype(jnp.bfloat16)

    h = jnp.dot(x, w1_ref[...], preferred_element_type=jnp.float32)
    h = jnp.maximum(h + b1_ref[...], 0.0)

    h = jnp.dot(h.astype(jnp.bfloat16), w2_ref[...],
                preferred_element_type=jnp.float32)
    h = jnp.maximum(h + b2_ref[...], 0.0)

    h = jnp.dot(h.astype(jnp.bfloat16), w3_ref[...],
                preferred_element_type=jnp.float32)
    h = jnp.maximum(h + b3_ref[...], 0.0)

    logits = jnp.dot(h.astype(jnp.bfloat16), w4_ref[...],
                     preferred_element_type=jnp.float32)
    logits = logits + b4_ref[...]
    # Sigmoid in f32, store bf16 (lane-dense 256-wide output tile).
    o_ref[...] = jax.nn.sigmoid(logits).astype(o_ref.dtype)


def prepare_params(params):
    """One-time conversion of parameters to kernel dtypes (bf16 W, f32 b).

    Call once outside the serving loop so no per-forward convert pass runs.
    """
    w1, b1, w2, b2, w3, b3, w4, b4 = params
    ws = [w.astype(jnp.bfloat16) for w in (w1, w2, w3, w4)]
    bs = [b.astype(jnp.float32) for b in (b1, b2, b3, b4)]
    return (ws[0], bs[0], ws[1], bs[1], ws[2], bs[2], ws[3], bs[3])


@functools.partial(jax.jit, static_argnames=("block_b",))
def arxiv_abstract_classifier(x, params, *, block_b=1024):
    """Forward pass: sigmoid(relu(relu(relu(x W1+b1) W2+b2) W3+b3) W4+b4).

    `params` should come from prepare_params() (bf16 weights, f32 biases);
    f32 params also work (they are converted inside the jit, costing one
    extra pass over ~1.2 MiB of weights per compile signature).
    """
    w1, b1, w2, b2, w3, b3, w4, b4 = params
    B, D_in = x.shape
    num_classes = w4.shape[1]

    weights = [w.astype(jnp.bfloat16) for w in (w1, w2, w3, w4)]
    biases = [b.astype(jnp.float32) for b in (b1, b2, b3, b4)]

    # Pad the final layer to a lane multiple (128) -> lane-dense output stores.
    c_pad = _round_up(num_classes, 128)
    if c_pad != num_classes:
        weights[3] = jnp.pad(weights[3], ((0, 0), (0, c_pad - num_classes)))
        biases[3] = jnp.pad(biases[3], ((0, 0), (0, c_pad - num_classes)))

    # --- Batch tiling -------------------------------------------------------
    # grid first (cdiv), then the smallest 8-aligned tile that covers B with
    # that many steps -> ragged batches pad by < grid*8 rows instead of up to
    # a full tile. For moderate batches keep >= 2 grid steps so the "parallel"
    # batch axis can be sharded across v7x's two TensorCores.
    grid = max(1, pl.cdiv(B, block_b))
    if grid == 1 and B >= 256:
        grid = 2
    tb = _round_up(pl.cdiv(B, grid), 8)
    b_pad = grid * tb

    x_in = x
    if b_pad != B:
        x_in = jnp.pad(x_in, ((0, b_pad - B), (0, 0)))

    # Constant index_map -> one resident VMEM copy of each weight/bias,
    # re-used across all batch tiles (no per-step re-DMA).
    resident = lambda a: pl.BlockSpec(a.shape, lambda i: (0, 0))

    flops = 2 * b_pad * (D_in * 512 + 512 * 256 + 256 * 128 + 128 * c_pad)
    bytes_accessed = (
        b_pad * D_in * x_in.dtype.itemsize        # x read
        + b_pad * c_pad * 2                       # bf16 output write
        + sum(int(w.size) * 2 for w in weights)   # bf16 weights
        + sum(int(b.size) * 4 for b in biases)    # f32 biases
    )
    cost = pl.CostEstimate(flops=flops,
                           transcendentals=b_pad * c_pad,
                           bytes_accessed=bytes_accessed)

    out = pl.pallas_call(
        _mlp_kernel,
        out_shape=jax.ShapeDtypeStruct((b_pad, c_pad), jnp.bfloat16),
        grid=(grid,),
        in_specs=[pl.BlockSpec((tb, D_in), lambda i: (i, 0))]
                 + [resident(w) for w in weights]
                 + [resident(b) for b in biases],
        out_specs=pl.BlockSpec((tb, c_pad), lambda i: (i, 0)),
        compiler_params=pltpu.CompilerParams(
            dimension_semantics=("parallel",)),
        cost_estimate=cost,
    )(x_in, *weights, *biases)

    return out[:B, :num_classes].astype(x.dtype)


def init_params(key, input_size=768, num_classes=176, dtype=jnp.float32):
    """Deterministic PyTorch-style (uniform +/- 1/sqrt(fan_in)) init."""
    dims = [input_size, 512, 256, 128, num_classes]
    params = []
    for i in range(4):
        fan_in, fan_out = dims[i], dims[i + 1]
        key, kw, kb = jax.random.split(key, 3)
        bound = 1.0 / (fan_in ** 0.5)
        w = jax.random.uniform(kw, (fan_in, fan_out), dtype,
                               minval=-bound, maxval=bound)
        b = jax.random.uniform(kb, (1, fan_out), dtype,
                               minval=-bound, maxval=bound)
        params += [w, b]
    return tuple(params)


def _reference(x, params):
    w1, b1, w2, b2, w3, b3, w4, b4 = params
    h = jax.nn.relu(x @ w1 + b1)
    h = jax.nn.relu(h @ w2 + b2)
    h = jax.nn.relu(h @ w3 + b3)
    return jax.nn.sigmoid(h @ w4 + b4)


if __name__ == "__main__":
    key = jax.random.PRNGKey(0)
    key, kx1, kx2 = jax.random.split(key, 3)

    input_size, num_classes = 768, 176
    params_f32 = init_params(key, input_size, num_classes)
    params = prepare_params(params_f32)   # one-time bf16/f32 conversion

    # Small primary case (single tile, grid=1).
    batch = 8
    x = jax.random.normal(kx1, (batch, input_size), jnp.float32)
    out = arxiv_abstract_classifier(x, params)
    out = jax.block_until_ready(out)
    ref = _reference(x, params_f32)
    assert out.shape == (batch, num_classes)
    # bf16 MXU operands / bf16 output store (f32 accumulate) -> loosened
    # tolerance vs the f32 reference.
    assert jnp.allclose(out, ref, atol=2e-2, rtol=2e-2)

    # Ragged / multi-tile path: B=260 -> grid=2, tb=136, padded to 272 rows.
    batch2 = 260
    x2 = jax.random.normal(kx2, (batch2, input_size), jnp.float32)
    out2 = jax.block_until_ready(arxiv_abstract_classifier(x2, params))
    ref2 = _reference(x2, params_f32)
    assert out2.shape == (batch2, num_classes)
    assert jnp.allclose(out2, ref2, atol=2e-2, rtol=2e-2)

    print("KERNEL_OK")
</pallas_src>

<mosaic_0001>
module attributes {stable_mosaic.version = 11 : i64} {
  func.func @_mlp_kernel(%arg0: i32, %arg1: memref<8x768xf32, #tpu.memory_space<vmem>>, %arg2: memref<768x512xbf16, #tpu.memory_space<vmem>>, %arg3: memref<512x256xbf16, #tpu.memory_space<vmem>>, %arg4: memref<256x128xbf16, #tpu.memory_space<vmem>>, %arg5: memref<128x256xbf16, #tpu.memory_space<vmem>>, %arg6: memref<1x512xf32, #tpu.memory_space<vmem>>, %arg7: memref<1x256xf32, #tpu.memory_space<vmem>>, %arg8: memref<1x128xf32, #tpu.memory_space<vmem>>, %arg9: memref<1x256xf32, #tpu.memory_space<vmem>>, %arg10: memref<8x256xbf16, #tpu.memory_space<vmem>>) attributes {dimension_semantics = [#tpu.dimension_semantics<parallel>], iteration_bounds = array<i64: 1>, scalar_prefetch = 0 : i64, scratch_operands = 0 : i64, tpu.core_type = #tpu.core_type<tc>, window_params = [{transform_indices = @transform_0, window_bounds = array<i64: 8, 768>}, {pipeline_mode = #tpu.pipeline_mode<synchronous>, transform_indices = @transform_1, window_bounds = array<i64: 768, 512>}, {pipeline_mode = #tpu.pipeline_mode<synchronous>, transform_indices = @transform_2, window_bounds = array<i64: 512, 256>}, {pipeline_mode = #tpu.pipeline_mode<synchronous>, transform_indices = @transform_3, window_bounds = array<i64: 256, 128>}, {pipeline_mode = #tpu.pipeline_mode<synchronous>, transform_indices = @transform_4, window_bounds = array<i64: 128, 256>}, {pipeline_mode = #tpu.pipeline_mode<synchronous>, transform_indices = @transform_5, window_bounds = array<i64: 1, 512>}, {pipeline_mode = #tpu.pipeline_mode<synchronous>, transform_indices = @transform_6, window_bounds = array<i64: 1, 256>}, {pipeline_mode = #tpu.pipeline_mode<synchronous>, transform_indices = @transform_7, window_bounds = array<i64: 1, 128>}, {pipeline_mode = #tpu.pipeline_mode<synchronous>, transform_indices = @transform_8, window_bounds = array<i64: 1, 256>}, {transform_indices = @transform_9, window_bounds = array<i64: 8, 256>}]} {
    %c0 = arith.constant 0 : index
    %c0_0 = arith.constant 0 : index
    %0 = vector.load %arg1[%c0, %c0_0] : memref<8x768xf32, #tpu.memory_space<vmem>>, vector<8x768xf32>
    %1 = arith.truncf %0 : vector<8x768xf32> to vector<8x768xbf16>
    %c0_1 = arith.constant 0 : index
    %c0_2 = arith.constant 0 : index
    %2 = vector.load %arg2[%c0_1, %c0_2] : memref<768x512xbf16, #tpu.memory_space<vmem>>, vector<768x512xbf16>
    %cst = arith.constant dense<0.000000e+00> : vector<8x512xf32>
    %3 = tpu.matmul %1, %2, %cst {dimension_numbers = #tpu.dot_dimension_numbers<[1], [0], [0], [1], [0, 0, 1, 1], [], []>} : vector<8x768xbf16>, vector<768x512xbf16>, vector<8x512xf32> -> vector<8x512xf32>
    %c0_3 = arith.constant 0 : index
    %c0_4 = arith.constant 0 : index
    %4 = vector.load %arg6[%c0_3, %c0_4] : memref<1x512xf32, #tpu.memory_space<vmem>>, vector<1x512xf32>
    %5 = vector.broadcast %4 : vector<1x512xf32> to vector<8x512xf32>
    %6 = arith.addf %3, %5 : vector<8x512xf32>
    %cst_5 = arith.constant 0.000000e+00 : f32
    %7 = vector.broadcast %cst_5 : f32 to vector<8x512xf32>
    %8 = arith.maximumf %6, %7 : vector<8x512xf32>
    %9 = arith.truncf %8 : vector<8x512xf32> to vector<8x512xbf16>
    %c0_6 = arith.constant 0 : index
    %c0_7 = arith.constant 0 : index
    %10 = vector.load %arg3[%c0_6, %c0_7] : memref<512x256xbf16, #tpu.memory_space<vmem>>, vector<512x256xbf16>
    %cst_8 = arith.constant dense<0.000000e+00> : vector<8x256xf32>
    %11 = tpu.matmul %9, %10, %cst_8 {dimension_numbers = #tpu.dot_dimension_numbers<[1], [0], [0], [1], [0, 0, 1, 1], [], []>} : vector<8x512xbf16>, vector<512x256xbf16>, vector<8x256xf32> -> vector<8x256xf32>
    %c0_9 = arith.constant 0 : index
    %c0_10 = arith.constant 0 : index
    %12 = vector.load %arg7[%c0_9, %c0_10] : memref<1x256xf32, #tpu.memory_space<vmem>>, vector<1x256xf32>
    %13 = vector.broadcast %12 : vector<1x256xf32> to vector<8x256xf32>
    %14 = arith.addf %11, %13 : vector<8x256xf32>
    %cst_11 = arith.constant 0.000000e+00 : f32
    %15 = vector.broadcast %cst_11 : f32 to vector<8x256xf32>
    %16 = arith.maximumf %14, %15 : vector<8x256xf32>
    %17 = arith.truncf %16 : vector<8x256xf32> to vector<8x256xbf16>
    %c0_12 = arith.constant 0 : index
    %c0_13 = arith.constant 0 : index
    %18 = vector.load %arg4[%c0_12, %c0_13] : memref<256x128xbf16, #tpu.memory_space<vmem>>, vector<256x128xbf16>
    %cst_14 = arith.constant dense<0.000000e+00> : vector<8x128xf32>
    %19 = tpu.matmul %17, %18, %cst_14 {dimension_numbers = #tpu.dot_dimension_numbers<[1], [0], [0], [1], [0, 0, 1, 1], [], []>} : vector<8x256xbf16>, vector<256x128xbf16>, vector<8x128xf32> -> vector<8x128xf32>
    %c0_15 = arith.constant 0 : index
    %c0_16 = arith.constant 0 : index
    %20 = vector.load %arg8[%c0_15, %c0_16] : memref<1x128xf32, #tpu.memory_space<vmem>>, vector<1x128xf32>
    %21 = vector.broadcast %20 : vector<1x128xf32> to vector<8x128xf32>
    %22 = arith.addf %19, %21 : vector<8x128xf32>
    %cst_17 = arith.constant 0.000000e+00 : f32
    %23 = vector.broadcast %cst_17 : f32 to vector<8x128xf32>
    %24 = arith.maximumf %22, %23 : vector<8x128xf32>
    %25 = arith.truncf %24 : vector<8x128xf32> to vector<8x128xbf16>
    %c0_18 = arith.constant 0 : index
    %c0_19 = arith.constant 0 : index
    %26 = vector.load %arg5[%c0_18, %c0_19] : memref<128x256xbf16, #tpu.memory_space<vmem>>, vector<128x256xbf16>
    %cst_20 = arith.constant dense<0.000000e+00> : vector<8x256xf32>
    %27 = tpu.matmul %25, %26, %cst_20 {dimension_numbers = #tpu.dot_dimension_numbers<[1], [0], [0], [1], [0, 0, 1, 1], [], []>} : vector<8x128xbf16>, vector<128x256xbf16>, vector<8x256xf32> -> vector<8x256xf32>
    %c0_21 = arith.constant 0 : index
    %c0_22 = arith.constant 0 : index
    %28 = vector.load %arg9[%c0_21, %c0_22] : memref<1x256xf32, #tpu.memory_space<vmem>>, vector<1x256xf32>
    %29 = vector.broadcast %28 : vector<1x256xf32> to vector<8x256xf32>
    %30 = arith.addf %27, %29 : vector<8x256xf32>
    %31 = arith.negf %30 : vector<8x256xf32>
    %32 = math.exp %31 : vector<8x256xf32>
    %cst_23 = arith.constant 1.000000e+00 : f32
    %33 = vector.broadcast %cst_23 : f32 to vector<8x256xf32>
    %34 = arith.addf %33, %32 : vector<8x256xf32>
    %35 = arith.divf %33, %34 : vector<8x256xf32>
    %36 = arith.truncf %35 : vector<8x256xf32> to vector<8x256xbf16>
    %c0_24 = arith.constant 0 : index
    %c0_25 = arith.constant 0 : index
    %37 = vector.load %arg10[%c0_24, %c0_25] : memref<8x256xbf16, #tpu.memory_space<vmem>>, vector<8x256xbf16>
    tpu.vector_store %arg10[%c0_24, %c0_25], %36 {strides = array<i32>} : memref<8x256xbf16, #tpu.memory_space<vmem>>, vector<8x256xbf16>,
    return
  }
  func.func @transform_0(%arg0: i32) -> (i32, i32) {
    %c0_i32 = arith.constant 0 : i32
    %c0_i32_0 = arith.constant 0 : i32
    return %arg0, %c0_i32 : i32, i32
  }
  func.func @transform_1(%arg0: i32) -> (i32, i32) {
    %c0_i32 = arith.constant 0 : i32
    %c0_i32_0 = arith.constant 0 : i32
    %c0_i32_1 = arith.constant 0 : i32
    return %c0_i32, %c0_i32_0 : i32, i32
  }
  func.func @transform_2(%arg0: i32) -> (i32, i32) {
    %c0_i32 = arith.constant 0 : i32
    %c0_i32_0 = arith.constant 0 : i32
    %c0_i32_1 = arith.constant 0 : i32
    return %c0_i32, %c0_i32_0 : i32, i32
  }
  func.func @transform_3(%arg0: i32) -> (i32, i32) {
    %c0_i32 = arith.constant 0 : i32
    %c0_i32_0 = arith.constant 0 : i32
    %c0_i32_1 = arith.constant 0 : i32
    return %c0_i32, %c0_i32_0 : i32, i32
  }
  func.func @transform_4(%arg0: i32) -> (i32, i32) {
    %c0_i32 = arith.constant 0 : i32
    %c0_i32_0 = arith.constant 0 : i32
    %c0_i32_1 = arith.constant 0 : i32
    return %c0_i32, %c0_i32_0 : i32, i32
  }
  func.func @transform_5(%arg0: i32) -> (i32, i32) {
    %c0_i32 = arith.constant 0 : i32
    %c0_i32_0 = arith.constant 0 : i32
    %c0_i32_1 = arith.constant 0 : i32
    return %c0_i32, %c0_i32_0 : i32, i32
  }
  func.func @transform_6(%arg0: i32) -> (i32, i32) {
    %c0_i32 = arith.constant 0 : i32
    %c0_i32_0 = arith.constant 0 : i32
    %c0_i32_1 = arith.constant 0 : i32
    return %c0_i32, %c0_i32_0 : i32, i32
  }
  func.func @transform_7(%arg0: i32) -> (i32, i32) {
    %c0_i32 = arith.constant 0 : i32
    %c0_i32_0 = arith.constant 0 : i32
    %c0_i32_1 = arith.constant 0 : i32
    return %c0_i32, %c0_i32_0 : i32, i32
  }
  func.func @transform_8(%arg0: i32) -> (i32, i32) {
    %c0_i32 = arith.constant 0 : i32
    %c0_i32_0 = arith.constant 0 : i32
    %c0_i32_1 = arith.constant 0 : i32
    return %c0_i32, %c0_i32_0 : i32, i32
  }
  func.func @transform_9(%arg0: i32) -> (i32, i32) {
    %c0_i32 = arith.constant 0 : i32
    %c0_i32_0 = arith.constant 0 : i32
    return %arg0, %c0_i32 : i32, i32
  }
}

</mosaic_0001>

<bundles_post_ra>
// kernel: arxiv_abstract_classifier.1
= control target key start
LH: loop header
LB: loop body
LE: loop exit
PB: predicated region body
PF: predicated region fallthrough
CT: control target
= control target key end

     0   :  { %14 = vsyncpa [#allocation3], 0  ;;  %s3360_s0 = inlined_call_operand.vmem [shape: f32[8,768], index: 0, kind: input, shape index: {}]   ;;  %s3361_s1 = inlined_call_operand.hbm [shape: bf16[768,512], index: 1, kind: input, shape index: {}]   ;;  %s3362_s2 = inlined_call_operand.hbm [shape: bf16[512,256], index: 2, kind: input, shape index: {}]   ;;  %s3363_s3 = inlined_call_operand.vmem [shape: bf16[256,128], index: 3, kind: input, shape index: {}]   ;;  %s3364_s4 = inlined_call_operand.vmem [shape: bf16[128,256], index: 4, kind: input, shape index: {}]   ;;  %s3365_s5 = inlined_call_operand.vmem [shape: f32[1,512], index: 5, kind: input, shape index: {}]   ;;  %s3366_s6 = inlined_call_operand.vmem [shape: f32[1,256], index: 6, kind: input, shape index: {}]   ;;  %s3367_s7 = inlined_call_operand.vmem [shape: f32[1,128], index: 7, kind: input, shape index: {}]   ;;  %s3368_s8 = inlined_call_operand.vmem [shape: f32[1,256], index: 8, kind: input, shape index: {}]   ;;  %s3369_s9 = inlined_call_operand.vmem [shape: bf16[8,256], index: 9, kind: output, shape index: {}]  }
   0x1   :  { %15 = vsyncpa [#allocation5], 0  ;;  %s3134_s30 = smov [#allocation2]  }
   0x2   :  { %s23_s10 = sshll.u32 %s3134_s30, 4  ;;  %s24_s10 = int_to_ptr.vmem [resolvable:$true] %s23_s10 }
   0x3   :  { %s3098_s11 = scalar_lea.vmem %s24_s10, 24576  ;;  %p3103_p1 = scmp.lt.s32.totalorder %s24_s10, %s24_s10 }
   0x4   :  { %p3099_p0 = scmp.ne.s32.totalorder %s24_s10, %s3098_s11  ;;  %p3104_p2 = scmp.lt.s32.totalorder %s3098_s11, %s3098_s11 }
   0x6   :  { %p3105_p3 = por %p3104_p2, %p3103_p1 }
   0x8   :  { %p3106_p4 = pnand %p3105_p3, %p3099_p0 }
   0xa   :  { %3109 = shalt.err (!%p3106_p4)
}
   0xb   :  { %s3135_s12 = smov 256   ;;  %s3136_s13 = smov 16  }
   0xc   :  { %29 = dma.hbm_to_vmem [thread:$0]  %s3361_s1, 24576, %s24_s10, [#allocation3], %s3135_s12, %s3135_s12, %s3136_s13  }
   0xd   :  { %s3137_s16 = smov [#allocation4]  }
   0xe   :  { %s35_s17 = sshll.u32 %s3137_s16, 4  ;;  %s36_s17 = int_to_ptr.vmem [resolvable:$true] %s35_s17 }
   0xf   :  { %s3118_s18 = scalar_lea.vmem %s36_s17, 8192  ;;  %p3123_p6 = scmp.lt.s32.totalorder %s36_s17, %s36_s17 }
  0x10   :  { %p3119_p5 = scmp.ne.s32.totalorder %s36_s17, %s3118_s18  ;;  %p3124_p7 = scmp.lt.s32.totalorder %s3118_s18, %s3118_s18 }
  0x12   :  { %p3125_p8 = por %p3124_p7, %p3123_p6 }
  0x14   :  { %p3126_p9 = pnand %p3125_p8, %p3119_p5 }
  0x16   :  { %3129 = shalt.err (!%p3126_p9)
}
  0x17   :  { %s3138_s19 = smov 128   ;;  %s3139_s20 = smov 8  }
  0x18   :  { %41 = dma.hbm_to_vmem [thread:$0]  %s3362_s2, 8192, %s36_s17, [#allocation5], %s3138_s19, %s3138_s19, %s3139_s20  }
  0x19   :  { %3130 = dma.done.wait [#allocation3], 24576  }
  0x1a   :  { %3131 = vsyncadd [#allocation3], 4294942720 }
  0x1b   :  { %3132 = dma.done.wait [#allocation5], 8192  }
  0x1c   :  { %3133 = vsyncadd [#allocation5], 4294959104  ;;  %v2658_v0 = vld [vmem:[#allocation2 + $0xe4] ss:$16 sps:$4 sm:$0xff]   ;;  %v2662_v2 = vld [vmem:[#allocation2 + $0xe0] ss:$16 sps:$4 sm:$0xff]  }
  0x1d   :  { %v2660_v1 = vld [vmem:[#allocation2 + $0x2e4] ss:$16 sps:$4 sm:$0xff]   ;;  %1247 = vmatprep.subr.bf16.mxu0 %v2658_v0  ;;  %v2663_v3 = vld [vmem:[#allocation2 + $0x2e0] ss:$16 sps:$4 sm:$0xff]   ;;  %v62_v46 = vld [vmem:[%s3360_s0 + $0x8] sm:$0xff] }
  0x1e   :  { %1288 = vmatprep.subr.bf16.mxu1 %v2660_v1  ;;  %v2664_v4 = vld [vmem:[#allocation2 + $0xc4] ss:$16 sps:$4 sm:$0xff]   ;;  %1248 = vmatpush1.bf16.msra.mxu0 %v2662_v2  ;;  %v2668_v6 = vld [vmem:[#allocation2 + $0xc0] ss:$16 sps:$4 sm:$0xff]   ;;  %v3200_v49 = vpack.c.bf16 %v62_v46, %v62_v46  ;;  %v64_v50 = vld [vmem:[%s3360_s0 + $0x18] sm:$0xff] }
  0x1f   :  { %1289 = vmatpush1.bf16.msra.mxu1 %v2663_v3  ;;  %v2666_v5 = vld [vmem:[#allocation2 + $0x2c4] ss:$16 sps:$4 sm:$0xff]   ;;  %1249 = vmatprep.subr.bf16.mxu0 %v2664_v4  ;;  %v2669_v7 = vld [vmem:[#allocation2 + $0x2c0] ss:$16 sps:$4 sm:$0xff]   ;;  %v3205_v52 = vpack.c.bf16 %v64_v50, %v64_v50 }
  0x20   :  { %1290 = vmatprep.subr.bf16.mxu1 %v2666_v5  ;;  %v2670_v8 = vld [vmem:[#allocation2 + $0xa4] ss:$16 sps:$4 sm:$0xff]   ;;  %v2674_v10 = vld [vmem:[#allocation2 + $0xa0] ss:$16 sps:$4 sm:$0xff]   ;;  %1279 = vmatprep.mubr.bf16.mxu0 %v3200_v49 }
  0x21   :  { %v2672_v9 = vld [vmem:[#allocation2 + $0x2a4] ss:$16 sps:$4 sm:$0xff]   ;;  %v2675_v11 = vld [vmem:[#allocation2 + $0x2a0] ss:$16 sps:$4 sm:$0xff]   ;;  %1320 = vmatprep.mubr.bf16.mxu1 %v3205_v52 }
  0x22   :  { %1250 = vmatpush1.bf16.msra.mxu0 %v2668_v6  ;;  %v2676_v12 = vld [vmem:[#allocation2 + $0x84] ss:$16 sps:$4 sm:$0xff]   ;;  %v2680_v14 = vld [vmem:[#allocation2 + $0x80] ss:$16 sps:$4 sm:$0xff]  }
  0x23   :  { %1291 = vmatpush1.bf16.msra.mxu1 %v2669_v7  ;;  %1251 = vmatprep.subr.bf16.mxu0 %v2670_v8  ;;  %v2678_v13 = vld [vmem:[#allocation2 + $0x284] ss:$16 sps:$4 sm:$0xff]   ;;  %v2681_v15 = vld [vmem:[#allocation2 + $0x280] ss:$16 sps:$4 sm:$0xff]   ;;  %v2759_v7 = vld [vmem:[#allocation2 + $0xec] ss:$16 sps:$4 sm:$0xff]  }
  0x24   :  { %1292 = vmatprep.subr.bf16.mxu1 %v2672_v9  ;;  %v2682_v16 = vld [vmem:[#allocation2 + $0x64] ss:$16 sps:$4 sm:$0xff]   ;;  %v2686_v18 = vld [vmem:[#allocation2 + $0x60] ss:$16 sps:$4 sm:$0xff]  }
  0x25   :  { %v2684_v17 = vld [vmem:[#allocation2 + $0x264] ss:$16 sps:$4 sm:$0xff]   ;;  %v2687_v19 = vld [vmem:[#allocation2 + $0x260] ss:$16 sps:$4 sm:$0xff]  }
  0x26   :  { %1252 = vmatpush1.bf16.msra.mxu0 %v2674_v10  ;;  %v2688_v20 = vld [vmem:[#allocation2 + $0x44] ss:$16 sps:$4 sm:$0xff]   ;;  %v2692_v22 = vld [vmem:[#allocation2 + $0x40] ss:$16 sps:$4 sm:$0xff]  }
  0x27   :  { %1293 = vmatpush1.bf16.msra.mxu1 %v2675_v11  ;;  %1253 = vmatprep.subr.bf16.mxu0 %v2676_v12  ;;  %v2690_v21 = vld [vmem:[#allocation2 + $0x244] ss:$16 sps:$4 sm:$0xff]   ;;  %v2693_v23 = vld [vmem:[#allocation2 + $0x240] ss:$16 sps:$4 sm:$0xff]   ;;  %v2757_v11 = vld [vmem:[#allocation2 + $0xe8] ss:$16 sps:$4 sm:$0xff]  }
  0x28   :  { %1294 = vmatprep.subr.bf16.mxu1 %v2678_v13  ;;  %v2694_v24 = vld [vmem:[#allocation2 + $0x24] ss:$16 sps:$4 sm:$0xff]   ;;  %v2698_v26 = vld [vmem:[#allocation2 + $0x20] ss:$16 sps:$4 sm:$0xff]   ;;  %v2765_v13 = vld [vmem:[#allocation2 + $0xcc] ss:$16 sps:$4 sm:$0xff]  }
  0x29   :  { %v2696_v25 = vld [vmem:[#allocation2 + $0x224] ss:$16 sps:$4 sm:$0xff]   ;;  %v2699_v27 = vld [vmem:[#allocation2 + $0x220] ss:$16 sps:$4 sm:$0xff]  }
  0x2a   :  { %1254 = vmatpush1.bf16.msra.mxu0 %v2680_v14  ;;  %v2700_v28 = vld [vmem:[#allocation2 + $0x4] ss:$16 sps:$4 sm:$0xff]   ;;  %v2704_v30 = vld [vmem:[#allocation2] ss:$16 sps:$4 sm:$0xff]  }
  0x2b   :  { %1295 = vmatpush1.bf16.msra.mxu1 %v2681_v15  ;;  %1255 = vmatprep.subr.bf16.mxu0 %v2682_v16  ;;  %v2702_v29 = vld [vmem:[#allocation2 + $0x204] ss:$16 sps:$4 sm:$0xff]   ;;  %v2705_v31 = vld [vmem:[#allocation2 + $0x200] ss:$16 sps:$4 sm:$0xff]   ;;  %v2763_v15 = vld [vmem:[#allocation2 + $0xc8] ss:$16 sps:$4 sm:$0xff]  }
  0x2c   :  { %1296 = vmatprep.subr.bf16.mxu1 %v2684_v17  ;;  %v2706_v32 = vld [vmem:[#allocation2 + $0x1e4] ss:$16 sps:$4 sm:$0xff]   ;;  %v2710_v34 = vld [vmem:[#allocation2 + $0x1e0] ss:$16 sps:$4 sm:$0xff]   ;;  %v2771_v17 = vld [vmem:[#allocation2 + $0xac] ss:$16 sps:$4 sm:$0xff]  }
  0x2d   :  { %v2708_v33 = vld [vmem:[#allocation2 + $0x3e4] ss:$16 sps:$4 sm:$0xff]   ;;  %v2711_v35 = vld [vmem:[#allocation2 + $0x3e0] ss:$16 sps:$4 sm:$0xff]  }
  0x2e   :  { %1256 = vmatpush1.bf16.msra.mxu0 %v2686_v18  ;;  %v2712_v36 = vld [vmem:[#allocation2 + $0x1c4] ss:$16 sps:$4 sm:$0xff]   ;;  %v2716_v38 = vld [vmem:[#allocation2 + $0x1c0] ss:$16 sps:$4 sm:$0xff]  }
  0x2f   :  { %1297 = vmatpush1.bf16.msra.mxu1 %v2687_v19  ;;  %1257 = vmatprep.subr.bf16.mxu0 %v2688_v20  ;;  %v2714_v37 = vld [vmem:[#allocation2 + $0x3c4] ss:$16 sps:$4 sm:$0xff]   ;;  %v2717_v39 = vld [vmem:[#allocation2 + $0x3c0] ss:$16 sps:$4 sm:$0xff]   ;;  %v2769_v19 = vld [vmem:[#allocation2 + $0xa8] ss:$16 sps:$4 sm:$0xff]  }
  0x30   :  { %1298 = vmatprep.subr.bf16.mxu1 %v2690_v21  ;;  %v2718_v40 = vld [vmem:[#allocation2 + $0x1a4] ss:$16 sps:$4 sm:$0xff]   ;;  %v2722_v42 = vld [vmem:[#allocation2 + $0x1a0] ss:$16 sps:$4 sm:$0xff]   ;;  %v2777_v21 = vld [vmem:[#allocation2 + $0x8c] ss:$16 sps:$4 sm:$0xff]  }
  0x31   :  { %v2720_v41 = vld [vmem:[#allocation2 + $0x3a4] ss:$16 sps:$4 sm:$0xff]   ;;  %v2723_v43 = vld [vmem:[#allocation2 + $0x3a0] ss:$16 sps:$4 sm:$0xff]  }
  0x32   :  { %1258 = vmatpush1.bf16.msra.mxu0 %v2692_v22  ;;  %v2724_v44 = vld [vmem:[#allocation2 + $0x184] ss:$16 sps:$4 sm:$0xff]   ;;  %v2728_v47 = vld [vmem:[#allocation2 + $0x180] ss:$16 sps:$4 sm:$0xff]  }
  0x33   :  { %1299 = vmatpush1.bf16.msra.mxu1 %v2693_v23  ;;  %1259 = vmatprep.subr.bf16.mxu0 %v2694_v24  ;;  %v2726_v45 = vld [vmem:[#allocation2 + $0x384] ss:$16 sps:$4 sm:$0xff]   ;;  %v2729_v48 = vld [vmem:[#allocation2 + $0x380] ss:$16 sps:$4 sm:$0xff]   ;;  %v2775_v23 = vld [vmem:[#allocation2 + $0x88] ss:$16 sps:$4 sm:$0xff]  }
  0x34   :  { %1300 = vmatprep.subr.bf16.mxu1 %v2696_v25  ;;  %v2730_v51 = vld [vmem:[#allocation2 + $0x164] ss:$16 sps:$4 sm:$0xff]   ;;  %v2734_v54 = vld [vmem:[#allocation2 + $0x160] ss:$16 sps:$4 sm:$0xff]   ;;  %v2783_v25 = vld [vmem:[#allocation2 + $0x6c] ss:$16 sps:$4 sm:$0xff]  }
  0x35   :  { %v2732_v53 = vld [vmem:[#allocation2 + $0x364] ss:$16 sps:$4 sm:$0xff]   ;;  %v2735_v55 = vld [vmem:[#allocation2 + $0x360] ss:$16 sps:$4 sm:$0xff]  }
  0x36   :  { %1260 = vmatpush1.bf16.msra.mxu0 %v2698_v26  ;;  %v2736_v56 = vld [vmem:[#allocation2 + $0x144] ss:$16 sps:$4 sm:$0xff]   ;;  %v2740_v58 = vld [vmem:[#allocation2 + $0x140] ss:$16 sps:$4 sm:$0xff]  }
  0x37   :  { %1301 = vmatpush1.bf16.msra.mxu1 %v2699_v27  ;;  %1261 = vmatprep.subr.bf16.mxu0 %v2700_v28  ;;  %v2738_v57 = vld [vmem:[#allocation2 + $0x344] ss:$16 sps:$4 sm:$0xff]   ;;  %v2741_v59 = vld [vmem:[#allocation2 + $0x340] ss:$16 sps:$4 sm:$0xff]   ;;  %v2781_v27 = vld [vmem:[#allocation2 + $0x68] ss:$16 sps:$4 sm:$0xff]  }
  0x38   :  { %1302 = vmatprep.subr.bf16.mxu1 %v2702_v29  ;;  %v2742_v60 = vld [vmem:[#allocation2 + $0x124] ss:$16 sps:$4 sm:$0xff]   ;;  %v2746_v62 = vld [vmem:[#allocation2 + $0x120] ss:$16 sps:$4 sm:$0xff]   ;;  %v2789_v29 = vld [vmem:[#allocation2 + $0x4c] ss:$16 sps:$4 sm:$0xff]  }
  0x39   :  { %v2744_v61 = vld [vmem:[#allocation2 + $0x324] ss:$16 sps:$4 sm:$0xff]   ;;  %v2747_v63 = vld [vmem:[#allocation2 + $0x320] ss:$16 sps:$4 sm:$0xff]  }
  0x3a   :  { %1262 = vmatpush1.bf16.msra.mxu0 %v2704_v30  ;;  %v2748_v0 = vld [vmem:[#allocation2 + $0x104] ss:$16 sps:$4 sm:$0xff]   ;;  %v2752_v2 = vld [vmem:[#allocation2 + $0x100] ss:$16 sps:$4 sm:$0xff]  }
  0x3b   :  { %1303 = vmatpush1.bf16.msra.mxu1 %v2705_v31  ;;  %1263 = vmatprep.subr.bf16.mxu0 %v2706_v32  ;;  %v2750_v1 = vld [vmem:[#allocation2 + $0x304] ss:$16 sps:$4 sm:$0xff]   ;;  %v2753_v3 = vld [vmem:[#allocation2 + $0x300] ss:$16 sps:$4 sm:$0xff]   ;;  %v2787_v31 = vld [vmem:[#allocation2 + $0x48] ss:$16 sps:$4 sm:$0xff]  }
  0x3c   :  { %1304 = vmatprep.subr.bf16.mxu1 %v2708_v33  ;;  %v61_v4 = vld [vmem:[%s3360_s0] sm:$0xff]  ;;  %v63_v5 = vld [vmem:[%s3360_s0 + $0x10] sm:$0xff]  ;;  %v2795_v33 = vld [vmem:[#allocation2 + $0x2c] ss:$16 sps:$4 sm:$0xff]  }
  0x3d   :  { %v2756_v6 = vld [vmem:[#allocation2 + $0x4e4] ss:$16 sps:$4 sm:$0xff]   ;;  %v3215_v8 = vpack.c.bf16 %v61_v4, %v61_v4  ;;  %v3217_v9 = vpack.c.bf16 %v63_v5, %v63_v5  ;;  %v2754_v10 = vld [vmem:[#allocation2 + $0x4e0] ss:$16 sps:$4 sm:$0xff]   ;;  %v2843_v4 = vld [vmem:[#allocation2 + $0x12c] ss:$16 sps:$4 sm:$0xff]  }
  0x3e   :  { %1264 = vmatpush2.bf16.msra.mxu0 %v2710_v34  ;;  %v2762_v12 = vld [vmem:[#allocation2 + $0x4c4] ss:$16 sps:$4 sm:$0xff]   ;;  %v2760_v14 = vld [vmem:[#allocation2 + $0x4c0] ss:$16 sps:$4 sm:$0xff]   ;;  %v66_v34 = vld [vmem:[%s3360_s0 + $0x28] sm:$0xff] }
  0x3f   :  { %1305 = vmatpush2.bf16.msra.mxu1 %v2711_v35  ;;  %1265 = vmatprep.subr.bf16.mxu0 %v2712_v36  ;;  %v2768_v16 = vld [vmem:[#allocation2 + $0x4a4] ss:$16 sps:$4 sm:$0xff]   ;;  %v2766_v18 = vld [vmem:[#allocation2 + $0x4a0] ss:$16 sps:$4 sm:$0xff]   ;;  %v3225_v35 = vpack.c.bf16 %v66_v34, %v66_v34  ;;  %v2885_v34 = vld [vmem:[#allocation2 + $0x44c] ss:$16 sps:$4 sm:$0xff]  }
  0x40   :  { %1306 = vmatprep.subr.bf16.mxu1 %v2714_v37  ;;  %v2774_v20 = vld [vmem:[#allocation2 + $0x484] ss:$16 sps:$4 sm:$0xff]   ;;  %v2772_v22 = vld [vmem:[#allocation2 + $0x480] ss:$16 sps:$4 sm:$0xff]   ;;  %v2793_v37 = vld [vmem:[#allocation2 + $0x28] ss:$16 sps:$4 sm:$0xff]  }
  0x41   :  { %v2780_v24 = vld [vmem:[#allocation2 + $0x464] ss:$16 sps:$4 sm:$0xff]   ;;  %v2778_v26 = vld [vmem:[#allocation2 + $0x460] ss:$16 sps:$4 sm:$0xff]  }
  0x42   :  { %1266 = vmatpush2.bf16.msra.mxu0 %v2716_v38  ;;  %v2786_v28 = vld [vmem:[#allocation2 + $0x444] ss:$16 sps:$4 sm:$0xff]   ;;  %v2784_v30 = vld [vmem:[#allocation2 + $0x440] ss:$16 sps:$4 sm:$0xff]  }
  0x43   :  { %1307 = vmatpush2.bf16.msra.mxu1 %v2717_v39  ;;  %1267 = vmatprep.subr.bf16.mxu0 %v2718_v40  ;;  %v2792_v32 = vld [vmem:[#allocation2 + $0x424] ss:$16 sps:$4 sm:$0xff]   ;;  %v2790_v36 = vld [vmem:[#allocation2 + $0x420] ss:$16 sps:$4 sm:$0xff]   ;;  %v2801_v39 = vld [vmem:[#allocation2 + $0xc] ss:$16 sps:$4 sm:$0xff]  }
  0x44   :  { %1308 = vmatprep.subr.bf16.mxu1 %v2720_v41  ;;  %v2798_v38 = vld [vmem:[#allocation2 + $0x404] ss:$16 sps:$4 sm:$0xff]   ;;  %v2796_v40 = vld [vmem:[#allocation2 + $0x400] ss:$16 sps:$4 sm:$0xff]   ;;  %v2799_v41 = vld [vmem:[#allocation2 + $0x8] ss:$16 sps:$4 sm:$0xff]  }
  0x45   :  { %v2810_v46 = vld [vmem:[#allocation2 + $0x5c4] ss:$16 sps:$4 sm:$0xff]   ;;  %v2838_v5 = vld [vmem:[#allocation2 + $0x520] ss:$16 sps:$4 sm:$0xff]  }
  0x46   :  { %1268 = vmatpush2.bf16.msra.mxu0 %v2722_v42  ;;  %v2804_v42 = vld [vmem:[#allocation2 + $0x5e4] ss:$16 sps:$4 sm:$0xff]  }
  0x47   :  { %1309 = vmatpush2.bf16.msra.mxu1 %v2723_v43  ;;  %1269 = vmatprep.subr.bf16.mxu0 %v2724_v44  ;;  %v2807_v43 = vld [vmem:[#allocation2 + $0x1ec] ss:$16 sps:$4 sm:$0xff]   ;;  %v2802_v44 = vld [vmem:[#allocation2 + $0x5e0] ss:$16 sps:$4 sm:$0xff]   ;;  %v2816_v50 = vld [vmem:[#allocation2 + $0x5a4] ss:$16 sps:$4 sm:$0xff]  }
  0x48   :  { %1310 = vmatprep.subr.bf16.mxu1 %v2726_v45  ;;  %v2805_v45 = vld [vmem:[#allocation2 + $0x1e8] ss:$16 sps:$4 sm:$0xff]  }
  0x4a   :  { %1270 = vmatpush2.bf16.msra.mxu0 %v2728_v47  ;;  %v2813_v47 = vld [vmem:[#allocation2 + $0x1cc] ss:$16 sps:$4 sm:$0xff]  }
  0x4b   :  { %1311 = vmatpush2.bf16.msra.mxu1 %v2729_v48  ;;  %1271 = vmatprep.subr.bf16.mxu0 %v2730_v51  ;;  %v2808_v48 = vld [vmem:[#allocation2 + $0x5c0] ss:$16 sps:$4 sm:$0xff]   ;;  %v2819_v51 = vld [vmem:[#allocation2 + $0x1ac] ss:$16 sps:$4 sm:$0xff]  }
  0x4c   :  { %1312 = vmatprep.subr.bf16.mxu1 %v2732_v53  ;;  %v2814_v53 = vld [vmem:[#allocation2 + $0x5a0] ss:$16 sps:$4 sm:$0xff]  }
  0x4e   :  { %1272 = vmatpush2.bf16.msra.mxu0 %v2734_v54  ;;  %v2817_v54 = vld [vmem:[#allocation2 + $0x1a8] ss:$16 sps:$4 sm:$0xff]  }
  0x4f   :  { %1313 = vmatpush2.bf16.msra.mxu1 %v2735_v55  ;;  %1273 = vmatprep.subr.bf16.mxu0 %v2736_v56  ;;  %v2822_v55 = vld [vmem:[#allocation2 + $0x584] ss:$16 sps:$4 sm:$0xff]   ;;  %v2825_v56 = vld [vmem:[#allocation2 + $0x18c] ss:$16 sps:$4 sm:$0xff]  }
  0x50   :  { %1314 = vmatprep.subr.bf16.mxu1 %v2738_v57  ;;  %v2820_v57 = vld [vmem:[#allocation2 + $0x580] ss:$16 sps:$4 sm:$0xff]  }
  0x52   :  { %1274 = vmatpush2.bf16.msra.mxu0 %v2740_v58  ;;  %v2823_v58 = vld [vmem:[#allocation2 + $0x188] ss:$16 sps:$4 sm:$0xff]  }
  0x53   :  { %1315 = vmatpush2.bf16.msra.mxu1 %v2741_v59  ;;  %1275 = vmatprep.subr.bf16.mxu0 %v2742_v60  ;;  %v2828_v59 = vld [vmem:[#allocation2 + $0x564] ss:$16 sps:$4 sm:$0xff]   ;;  %v2831_v60 = vld [vmem:[#allocation2 + $0x16c] ss:$16 sps:$4 sm:$0xff]  }
  0x54   :  { %1316 = vmatprep.subr.bf16.mxu1 %v2744_v61  ;;  %v2826_v61 = vld [vmem:[#allocation2 + $0x560] ss:$16 sps:$4 sm:$0xff]  }
  0x56   :  { %1276 = vmatpush2.bf16.msra.mxu0 %v2746_v62  ;;  %v2829_v62 = vld [vmem:[#allocation2 + $0x168] ss:$16 sps:$4 sm:$0xff]  }
  0x57   :  { %1317 = vmatpush2.bf16.msra.mxu1 %v2747_v63  ;;  %1277 = vmatprep.subr.bf16.mxu0 %v2748_v0  ;;  %v2834_v63 = vld [vmem:[#allocation2 + $0x544] ss:$16 sps:$4 sm:$0xff]   ;;  %v2837_v0 = vld [vmem:[#allocation2 + $0x14c] ss:$16 sps:$4 sm:$0xff]  }
  0x58   :  { %1318 = vmatprep.subr.bf16.mxu1 %v2750_v1  ;;  %v2832_v1 = vld [vmem:[#allocation2 + $0x540] ss:$16 sps:$4 sm:$0xff]  }
  0x5a   :  { %1278 = vmatpush2.bf16.msra.mxu0 %v2752_v2  ;;  %v2835_v2 = vld [vmem:[#allocation2 + $0x148] ss:$16 sps:$4 sm:$0xff]  }
  0x5b   :  { %1319 = vmatpush2.bf16.msra.mxu1 %v2753_v3  ;;  %1329 = vmatprep.subr.bf16.mxu0 %v2756_v6  ;;  %v2840_v3 = vld [vmem:[#allocation2 + $0x524] ss:$16 sps:$4 sm:$0xff]   ;;  %v2841_v6 = vld [vmem:[#allocation2 + $0x128] ss:$16 sps:$4 sm:$0xff]  }
  0x5c   :  { %1370 = vmatprep.subr.bf16.mxu1 %v2759_v7  ;;  %v2846_v7 = vld [vmem:[#allocation2 + $0x504] ss:$16 sps:$4 sm:$0xff]  }
  0x5d   :  { %1280 = vmatmul.mubr.bf16.vlgmr.msra.gmra.mxu0 %v3215_v8 }
  0x5e   :  { %1321 = vmatmul.mubr.bf16.vlgmr.msra.gmra.mxu1 %v3217_v9  ;;  %1330 = vmatpush1.bf16.msra.mxu0 %v2754_v10  ;;  %v2849_v10 = vld [vmem:[#allocation2 + $0x10c] ss:$16 sps:$4 sm:$0xff]  }
  0x5f   :  { %1371 = vmatpush1.bf16.msra.mxu1 %v2757_v11  ;;  %1331 = vmatprep.subr.bf16.mxu0 %v2762_v12  ;;  %v2844_v11 = vld [vmem:[#allocation2 + $0x500] ss:$16 sps:$4 sm:$0xff]   ;;  %v2847_v12 = vld [vmem:[#allocation2 + $0x108] ss:$16 sps:$4 sm:$0xff]  }
  0x60   :  { %1372 = vmatprep.subr.bf16.mxu1 %v2765_v13  ;;  %1402 = vmatprep.mubr.bf16.mxu1 %v3200_v49  ;;  %v2811_v49 = vld [vmem:[#allocation2 + $0x1c8] ss:$16 sps:$4 sm:$0xff]   ;;  %v65_v13 = vld [vmem:[%s3360_s0 + $0x20] sm:$0xff] }
  0x61   :  { %1361 = vmatprep.mubr.bf16.mxu0 %v3225_v35 }
  0x62   :  { %1332 = vmatpush1.bf16.msra.mxu0 %v2760_v14  ;;  %v2852_v14 = vld [vmem:[#allocation2 + $0x2ec] ss:$16 sps:$4 sm:$0xff]  }
  0x63   :  { %1373 = vmatpush1.bf16.msra.mxu1 %v2763_v15  ;;  %1333 = vmatprep.subr.bf16.mxu0 %v2768_v16  ;;  %v2855_v15 = vld [vmem:[#allocation2 + $0x4ec] ss:$16 sps:$4 sm:$0xff]   ;;  %v3231_v16 = vpack.c.bf16 %v65_v13, %v65_v13 }
  0x64   :  { %1374 = vmatprep.subr.bf16.mxu1 %v2771_v17  ;;  %v2850_v17 = vld [vmem:[#allocation2 + $0x2e8] ss:$16 sps:$4 sm:$0xff]   ;;  %v2945_v13 = vld [vmem:[#allocation2 + $0x50c] ss:$16 sps:$4 sm:$0xff]  }
  0x66   :  { %1334 = vmatpush1.bf16.msra.mxu0 %v2766_v18  ;;  %v2853_v18 = vld [vmem:[#allocation2 + $0x4e8] ss:$16 sps:$4 sm:$0xff]  }
  0x67   :  { %1375 = vmatpush1.bf16.msra.mxu1 %v2769_v19  ;;  %1335 = vmatprep.subr.bf16.mxu0 %v2774_v20  ;;  %v2858_v19 = vld [vmem:[#allocation2 + $0x2cc] ss:$16 sps:$4 sm:$0xff]  }
  0x68   :  { %1376 = vmatprep.subr.bf16.mxu1 %v2777_v21  ;;  %v2861_v20 = vld [vmem:[#allocation2 + $0x4cc] ss:$16 sps:$4 sm:$0xff]   ;;  %v2856_v21 = vld [vmem:[#allocation2 + $0x2c8] ss:$16 sps:$4 sm:$0xff]  }
  0x6a   :  { %1336 = vmatpush1.bf16.msra.mxu0 %v2772_v22  ;;  %v2859_v22 = vld [vmem:[#allocation2 + $0x4c8] ss:$16 sps:$4 sm:$0xff]  }
  0x6b   :  { %1377 = vmatpush1.bf16.msra.mxu1 %v2775_v23  ;;  %1337 = vmatprep.subr.bf16.mxu0 %v2780_v24  ;;  %v2864_v23 = vld [vmem:[#allocation2 + $0x2ac] ss:$16 sps:$4 sm:$0xff]  }
  0x6c   :  { %1378 = vmatprep.subr.bf16.mxu1 %v2783_v25  ;;  %v2867_v24 = vld [vmem:[#allocation2 + $0x4ac] ss:$16 sps:$4 sm:$0xff]   ;;  %v2862_v25 = vld [vmem:[#allocation2 + $0x2a8] ss:$16 sps:$4 sm:$0xff]  }
  0x6e   :  { %1338 = vmatpush1.bf16.msra.mxu0 %v2778_v26  ;;  %v2865_v26 = vld [vmem:[#allocation2 + $0x4a8] ss:$16 sps:$4 sm:$0xff]  }
  0x6f   :  { %1379 = vmatpush1.bf16.msra.mxu1 %v2781_v27  ;;  %1339 = vmatprep.subr.bf16.mxu0 %v2786_v28  ;;  %v2870_v27 = vld [vmem:[#allocation2 + $0x28c] ss:$16 sps:$4 sm:$0xff]  }
  0x70   :  { %1380 = vmatprep.subr.bf16.mxu1 %v2789_v29  ;;  %v2873_v28 = vld [vmem:[#allocation2 + $0x48c] ss:$16 sps:$4 sm:$0xff]   ;;  %v2871_v29 = vld [vmem:[#allocation2 + $0x488] ss:$16 sps:$4 sm:$0xff]  }
  0x72   :  { %1340 = vmatpush1.bf16.msra.mxu0 %v2784_v30  ;;  %v2876_v30 = vld [vmem:[#allocation2 + $0x26c] ss:$16 sps:$4 sm:$0xff]  }
  0x73   :  { %1381 = vmatpush1.bf16.msra.mxu1 %v2787_v31  ;;  %1341 = vmatprep.subr.bf16.mxu0 %v2792_v32  ;;  %v2879_v31 = vld [vmem:[#allocation2 + $0x46c] ss:$16 sps:$4 sm:$0xff]   ;;  %v2874_v32 = vld [vmem:[#allocation2 + $0x268] ss:$16 sps:$4 sm:$0xff]  }
  0x74   :  { %1382 = vmatprep.subr.bf16.mxu1 %v2795_v33  ;;  %v2882_v33 = vld [vmem:[#allocation2 + $0x24c] ss:$16 sps:$4 sm:$0xff]  }
  0x76   :  { %1342 = vmatpush1.bf16.msra.mxu0 %v2790_v36  ;;  %v2883_v36 = vld [vmem:[#allocation2 + $0x448] ss:$16 sps:$4 sm:$0xff]  }
  0x77   :  { %1383 = vmatpush1.bf16.msra.mxu1 %v2793_v37  ;;  %1343 = vmatprep.subr.bf16.mxu0 %v2798_v38  ;;  %v2888_v37 = vld [vmem:[#allocation2 + $0x22c] ss:$16 sps:$4 sm:$0xff]  }
  0x78   :  { %1384 = vmatprep.subr.bf16.mxu1 %v2801_v39  ;;  %v2891_v38 = vld [vmem:[#allocation2 + $0x42c] ss:$16 sps:$4 sm:$0xff]   ;;  %v2886_v39 = vld [vmem:[#allocation2 + $0x228] ss:$16 sps:$4 sm:$0xff]  }
  0x7a   :  { %1344 = vmatpush1.bf16.msra.mxu0 %v2796_v40  ;;  %v2889_v40 = vld [vmem:[#allocation2 + $0x428] ss:$16 sps:$4 sm:$0xff]  }
  0x7b   :  { %1385 = vmatpush1.bf16.msra.mxu1 %v2799_v41  ;;  %1345 = vmatprep.subr.bf16.mxu0 %v2804_v42  ;;  %v2894_v41 = vld [vmem:[#allocation2 + $0x20c] ss:$16 sps:$4 sm:$0xff]  }
  0x7c   :  { %1386 = vmatprep.subr.bf16.mxu1 %v2807_v43  ;;  %v2897_v42 = vld [vmem:[#allocation2 + $0x40c] ss:$16 sps:$4 sm:$0xff]   ;;  %v2892_v43 = vld [vmem:[#allocation2 + $0x208] ss:$16 sps:$4 sm:$0xff]  }
  0x7e   :  { %1346 = vmatpush2.bf16.msra.mxu0 %v2802_v44  ;;  %v2895_v44 = vld [vmem:[#allocation2 + $0x408] ss:$16 sps:$4 sm:$0xff]  }
  0x7f   :  { %1387 = vmatpush2.bf16.msra.mxu1 %v2805_v45  ;;  %1347 = vmatprep.subr.bf16.mxu0 %v2810_v46  ;;  %v2900_v45 = vld [vmem:[#allocation2 + $0x3ec] ss:$16 sps:$4 sm:$0xff]  }
  0x80   :  { %1388 = vmatprep.subr.bf16.mxu1 %v2813_v47  ;;  %v2903_v46 = vld [vmem:[#allocation2 + $0x5ec] ss:$16 sps:$4 sm:$0xff]   ;;  %v2898_v47 = vld [vmem:[#allocation2 + $0x3e8] ss:$16 sps:$4 sm:$0xff]  }
  0x82   :  { %1348 = vmatpush2.bf16.msra.mxu0 %v2808_v48  ;;  %v2901_v48 = vld [vmem:[#allocation2 + $0x5e8] ss:$16 sps:$4 sm:$0xff]  }
  0x83   :  { %1389 = vmatpush2.bf16.msra.mxu1 %v2811_v49  ;;  %1349 = vmatprep.subr.bf16.mxu0 %v2816_v50  ;;  %v2906_v49 = vld [vmem:[#allocation2 + $0x3cc] ss:$16 sps:$4 sm:$0xff]  }
  0x84   :  { %1390 = vmatprep.subr.bf16.mxu1 %v2819_v51  ;;  %v2909_v50 = vld [vmem:[#allocation2 + $0x5cc] ss:$16 sps:$4 sm:$0xff]   ;;  %v2904_v51 = vld [vmem:[#allocation2 + $0x3c8] ss:$16 sps:$4 sm:$0xff]  }
  0x86   :  { %1350 = vmatpush2.bf16.msra.mxu0 %v2814_v53  ;;  %v2907_v53 = vld [vmem:[#allocation2 + $0x5c8] ss:$16 sps:$4 sm:$0xff]  }
  0x87   :  { %1391 = vmatpush2.bf16.msra.mxu1 %v2817_v54  ;;  %1351 = vmatprep.subr.bf16.mxu0 %v2822_v55  ;;  %v2912_v54 = vld [vmem:[#allocation2 + $0x3ac] ss:$16 sps:$4 sm:$0xff]  }
  0x88   :  { %1392 = vmatprep.subr.bf16.mxu1 %v2825_v56  ;;  %v2915_v55 = vld [vmem:[#allocation2 + $0x5ac] ss:$16 sps:$4 sm:$0xff]   ;;  %v2910_v56 = vld [vmem:[#allocation2 + $0x3a8] ss:$16 sps:$4 sm:$0xff]  }
  0x8a   :  { %1352 = vmatpush2.bf16.msra.mxu0 %v2820_v57  ;;  %v2913_v57 = vld [vmem:[#allocation2 + $0x5a8] ss:$16 sps:$4 sm:$0xff]  }
  0x8b   :  { %1393 = vmatpush2.bf16.msra.mxu1 %v2823_v58  ;;  %1353 = vmatprep.subr.bf16.mxu0 %v2828_v59  ;;  %v2918_v58 = vld [vmem:[#allocation2 + $0x38c] ss:$16 sps:$4 sm:$0xff]  }
  0x8c   :  { %1394 = vmatprep.subr.bf16.mxu1 %v2831_v60  ;;  %v2921_v59 = vld [vmem:[#allocation2 + $0x58c] ss:$16 sps:$4 sm:$0xff]   ;;  %v2916_v60 = vld [vmem:[#allocation2 + $0x388] ss:$16 sps:$4 sm:$0xff]  }
  0x8e   :  { %1354 = vmatpush2.bf16.msra.mxu0 %v2826_v61  ;;  %v2919_v61 = vld [vmem:[#allocation2 + $0x588] ss:$16 sps:$4 sm:$0xff]  }
  0x8f   :  { %1395 = vmatpush2.bf16.msra.mxu1 %v2829_v62  ;;  %1355 = vmatprep.subr.bf16.mxu0 %v2834_v63  ;;  %v2924_v62 = vld [vmem:[#allocation2 + $0x36c] ss:$16 sps:$4 sm:$0xff]  }
  0x90   :  { %1396 = vmatprep.subr.bf16.mxu1 %v2837_v0  ;;  %v2927_v63 = vld [vmem:[#allocation2 + $0x56c] ss:$16 sps:$4 sm:$0xff]   ;;  %v2922_v0 = vld [vmem:[#allocation2 + $0x368] ss:$16 sps:$4 sm:$0xff]  }
  0x92   :  { %1356 = vmatpush2.bf16.msra.mxu0 %v2832_v1  ;;  %v2925_v1 = vld [vmem:[#allocation2 + $0x568] ss:$16 sps:$4 sm:$0xff]  }
  0x93   :  { %1397 = vmatpush2.bf16.msra.mxu1 %v2835_v2  ;;  %1357 = vmatprep.subr.bf16.mxu0 %v2840_v3  ;;  %v2930_v2 = vld [vmem:[#allocation2 + $0x34c] ss:$16 sps:$4 sm:$0xff]  }
  0x94   :  { %1398 = vmatprep.subr.bf16.mxu1 %v2843_v4  ;;  %v2933_v3 = vld [vmem:[#allocation2 + $0x54c] ss:$16 sps:$4 sm:$0xff]   ;;  %v2928_v4 = vld [vmem:[#allocation2 + $0x348] ss:$16 sps:$4 sm:$0xff]  }
  0x96   :  { %1358 = vmatpush2.bf16.msra.mxu0 %v2838_v5  ;;  %v2931_v5 = vld [vmem:[#allocation2 + $0x548] ss:$16 sps:$4 sm:$0xff]  }
  0x97   :  { %1399 = vmatpush2.bf16.msra.mxu1 %v2841_v6  ;;  %1359 = vmatprep.subr.bf16.mxu0 %v2846_v7  ;;  %v2936_v6 = vld [vmem:[#allocation2 + $0x32c] ss:$16 sps:$4 sm:$0xff]  }
  0x98   :  { %1400 = vmatprep.subr.bf16.mxu1 %v2849_v10  ;;  %v2939_v7 = vld [vmem:[#allocation2 + $0x52c] ss:$16 sps:$4 sm:$0xff]   ;;  %v2934_v10 = vld [vmem:[#allocation2 + $0x328] ss:$16 sps:$4 sm:$0xff]  }
  0x9a   :  { %1360 = vmatpush2.bf16.msra.mxu0 %v2844_v11  ;;  %v2937_v11 = vld [vmem:[#allocation2 + $0x528] ss:$16 sps:$4 sm:$0xff]  }
  0x9b   :  { %1401 = vmatpush2.bf16.msra.mxu1 %v2847_v12  ;;  %1411 = vmatprep.subr.bf16.mxu0 %v2852_v14  ;;  %v2942_v12 = vld [vmem:[#allocation2 + $0x30c] ss:$16 sps:$4 sm:$0xff]   ;;  %v2940_v14 = vld [vmem:[#allocation2 + $0x308] ss:$16 sps:$4 sm:$0xff]  }
  0x9c   :  { %1452 = vmatprep.subr.bf16.mxu1 %v2855_v15  ;;  %v2943_v15 = vld [vmem:[#allocation2 + $0x508] ss:$16 sps:$4 sm:$0xff]  }
  0x9d   :  { %1362 = vmatmul.mubr.bf16.vlgmr.msra.gmra.mxu0 %v3231_v16 }
  0x9e   :  { %1403 = vmatmul.mubr.bf16.vlgmr.msra.gmra.mxu1 %v3215_v8  ;;  %1412 = vmatpush1.bf16.msra.mxu0 %v2850_v17  ;;  %v2868_v8 = vld [vmem:[#allocation2 + $0x288] ss:$16 sps:$4 sm:$0xff]   ;;  %v2948_v17 = vld [vmem:[#allocation4 + $0x74] ss:$8 sps:$4 sm:$0xff]  }
  0x9f   :  { %1453 = vmatpush1.bf16.msra.mxu1 %v2853_v18  ;;  %1413 = vmatprep.subr.bf16.mxu0 %v2858_v19  ;;  %v2946_v18 = vld [vmem:[#allocation4 + $0x70] ss:$8 sps:$4 sm:$0xff]   ;;  %v2951_v19 = vld [vmem:[#allocation4 + $0x64] ss:$8 sps:$4 sm:$0xff]  }
  0xa0   :  { %1454 = vmatprep.subr.bf16.mxu1 %v2861_v20  ;;  %1443 = vmatprep.mubr.bf16.mxu0 %v3205_v52  ;;  %v2877_v52 = vld [vmem:[#allocation2 + $0x468] ss:$16 sps:$4 sm:$0xff]  }
  0xa1   :  { %1484 = vmatprep.mubr.bf16.mxu1 %v3225_v35  ;;  %v2880_v35 = vld [vmem:[#allocation2 + $0x248] ss:$16 sps:$4 sm:$0xff]  }
  0xa2   :  { %1414 = vmatpush1.bf16.msra.mxu0 %v2856_v21  ;;  %v2949_v20 = vld [vmem:[#allocation4 + $0x60] ss:$8 sps:$4 sm:$0xff]   ;;  %v2954_v21 = vld [vmem:[#allocation4 + $0x54] ss:$8 sps:$4 sm:$0xff]  }
  0xa3   :  { %1455 = vmatpush1.bf16.msra.mxu1 %v2859_v22  ;;  %1415 = vmatprep.subr.bf16.mxu0 %v2864_v23  ;;  %v2952_v22 = vld [vmem:[#allocation4 + $0x50] ss:$8 sps:$4 sm:$0xff]   ;;  %v2957_v23 = vld [vmem:[#allocation4 + $0x44] ss:$8 sps:$4 sm:$0xff]  }
  0xa4   :  { %1456 = vmatprep.subr.bf16.mxu1 %v2867_v24  ;;  %v2955_v24 = vld [vmem:[#allocation4 + $0x40] ss:$8 sps:$4 sm:$0xff]  }
  0xa6   :  { %1416 = vmatpush1.bf16.msra.mxu0 %v2862_v25  ;;  %v2960_v25 = vld [vmem:[#allocation4 + $0x34] ss:$8 sps:$4 sm:$0xff]  }
  0xa7   :  { %1457 = vmatpush1.bf16.msra.mxu1 %v2865_v26  ;;  %1417 = vmatprep.subr.bf16.mxu0 %v2870_v27  ;;  %v2994_v26 = vld [vmem:[#allocation4 + $0x170] ss:$8 sps:$4 sm:$0xff]   ;;  %v2996_v27 = vld [vmem:[#allocation4 + $0x174] ss:$8 sps:$4 sm:$0xff]  }
  0xa8   :  { %1458 = vmatprep.subr.bf16.mxu1 %v2873_v28  ;;  %v2999_v28 = vld [vmem:[#allocation4 + $0x164] ss:$8 sps:$4 sm:$0xff]  }
  0xaa   :  { %1418 = vmatpush1.bf16.msra.mxu0 %v2868_v8  ;;  %v2963_v8 = vld [vmem:[#allocation4 + $0x24] ss:$8 sps:$4 sm:$0xff]  }
  0xab   :  { %1459 = vmatpush1.bf16.msra.mxu1 %v2871_v29  ;;  %1419 = vmatprep.subr.bf16.mxu0 %v2876_v30  ;;  %v3002_v29 = vld [vmem:[#allocation4 + $0x154] ss:$8 sps:$4 sm:$0xff]   ;;  %v2961_v30 = vld [vmem:[#allocation4 + $0x20] ss:$8 sps:$4 sm:$0xff]  }
  0xac   :  { %1460 = vmatprep.subr.bf16.mxu1 %v2879_v31  ;;  %v3000_v31 = vld [vmem:[#allocation4 + $0x150] ss:$8 sps:$4 sm:$0xff]  }
  0xae   :  { %1420 = vmatpush1.bf16.msra.mxu0 %v2874_v32  ;;  %v2966_v32 = vld [vmem:[#allocation4 + $0x14] ss:$8 sps:$4 sm:$0xff]  }
  0xaf   :  { %1461 = vmatpush1.bf16.msra.mxu1 %v2877_v52  ;;  %1421 = vmatprep.subr.bf16.mxu0 %v2882_v33  ;;  %v3005_v52 = vld [vmem:[#allocation4 + $0x144] ss:$8 sps:$4 sm:$0xff]   ;;  %v2964_v33 = vld [vmem:[#allocation4 + $0x10] ss:$8 sps:$4 sm:$0xff]  }
  0xb0   :  { %1462 = vmatprep.subr.bf16.mxu1 %v2885_v34  ;;  %v3003_v34 = vld [vmem:[#allocation4 + $0x140] ss:$8 sps:$4 sm:$0xff]  }
  0xb2   :  { %1422 = vmatpush1.bf16.msra.mxu0 %v2880_v35  ;;  %v2969_v35 = vld [vmem:[#allocation4 + $0x4] ss:$8 sps:$4 sm:$0xff]  }
  0xb3   :  { %1463 = vmatpush1.bf16.msra.mxu1 %v2883_v36  ;;  %1423 = vmatprep.subr.bf16.mxu0 %v2888_v37  ;;  %v3008_v36 = vld [vmem:[#allocation4 + $0x134] ss:$8 sps:$4 sm:$0xff]   ;;  %v2967_v37 = vld [vmem:[#allocation4] ss:$8 sps:$4 sm:$0xff]  }
  0xb4   :  { %1464 = vmatprep.subr.bf16.mxu1 %v2891_v38  ;;  %v3006_v38 = vld [vmem:[#allocation4 + $0x130] ss:$8 sps:$4 sm:$0xff]  }
  0xb6   :  { %1424 = vmatpush1.bf16.msra.mxu0 %v2886_v39  ;;  %v2972_v39 = vld [vmem:[#allocation4 + $0xf4] ss:$8 sps:$4 sm:$0xff]  }
  0xb7   :  { %1465 = vmatpush1.bf16.msra.mxu1 %v2889_v40  ;;  %1425 = vmatprep.subr.bf16.mxu0 %v2894_v41  ;;  %v3011_v40 = vld [vmem:[#allocation4 + $0x124] ss:$8 sps:$4 sm:$0xff]   ;;  %v2970_v41 = vld [vmem:[#allocation4 + $0xf0] ss:$8 sps:$4 sm:$0xff]  }
  0xb8   :  { %1466 = vmatprep.subr.bf16.mxu1 %v2897_v42  ;;  %v3009_v42 = vld [vmem:[#allocation4 + $0x120] ss:$8 sps:$4 sm:$0xff]  }
  0xba   :  { %1426 = vmatpush1.bf16.msra.mxu0 %v2892_v43  ;;  %v2975_v43 = vld [vmem:[#allocation4 + $0xe4] ss:$8 sps:$4 sm:$0xff]  }
  0xbb   :  { %1467 = vmatpush1.bf16.msra.mxu1 %v2895_v44  ;;  %1427 = vmatprep.subr.bf16.mxu0 %v2900_v45  ;;  %v3014_v44 = vld [vmem:[#allocation4 + $0x114] ss:$8 sps:$4 sm:$0xff]   ;;  %v2973_v45 = vld [vmem:[#allocation4 + $0xe0] ss:$8 sps:$4 sm:$0xff]  }
  0xbc   :  { %1468 = vmatprep.subr.bf16.mxu1 %v2903_v46  ;;  %v3012_v46 = vld [vmem:[#allocation4 + $0x110] ss:$8 sps:$4 sm:$0xff]  }
  0xbe   :  { %1428 = vmatpush2.bf16.msra.mxu0 %v2898_v47  ;;  %v2978_v47 = vld [vmem:[#allocation4 + $0xd4] ss:$8 sps:$4 sm:$0xff]  }
  0xbf   :  { %1469 = vmatpush2.bf16.msra.mxu1 %v2901_v48  ;;  %1429 = vmatprep.subr.bf16.mxu0 %v2906_v49  ;;  %v3017_v48 = vld [vmem:[#allocation4 + $0x104] ss:$8 sps:$4 sm:$0xff]   ;;  %v2976_v49 = vld [vmem:[#allocation4 + $0xd0] ss:$8 sps:$4 sm:$0xff]  }
  0xc0   :  { %1470 = vmatprep.subr.bf16.mxu1 %v2909_v50  ;;  %v3015_v50 = vld [vmem:[#allocation4 + $0x100] ss:$8 sps:$4 sm:$0xff]  }
  0xc2   :  { %1430 = vmatpush2.bf16.msra.mxu0 %v2904_v51  ;;  %v2981_v51 = vld [vmem:[#allocation4 + $0xc4] ss:$8 sps:$4 sm:$0xff]  }
  0xc3   :  { %1471 = vmatpush2.bf16.msra.mxu1 %v2907_v53  ;;  %1431 = vmatprep.subr.bf16.mxu0 %v2912_v54  ;;  %v3020_v53 = vld [vmem:[#allocation4 + $0x1f4] ss:$8 sps:$4 sm:$0xff]   ;;  %v2979_v54 = vld [vmem:[#allocation4 + $0xc0] ss:$8 sps:$4 sm:$0xff]  }
  0xc4   :  { %1472 = vmatprep.subr.bf16.mxu1 %v2915_v55  ;;  %v3018_v55 = vld [vmem:[#allocation4 + $0x1f0] ss:$8 sps:$4 sm:$0xff]  }
  0xc6   :  { %1432 = vmatpush2.bf16.msra.mxu0 %v2910_v56  ;;  %v2984_v56 = vld [vmem:[#allocation4 + $0xb4] ss:$8 sps:$4 sm:$0xff]  }
  0xc7   :  { %1473 = vmatpush2.bf16.msra.mxu1 %v2913_v57  ;;  %1433 = vmatprep.subr.bf16.mxu0 %v2918_v58  ;;  %v3023_v57 = vld [vmem:[#allocation4 + $0x1e4] ss:$8 sps:$4 sm:$0xff]   ;;  %v2982_v58 = vld [vmem:[#allocation4 + $0xb0] ss:$8 sps:$4 sm:$0xff]  }
  0xc8   :  { %1474 = vmatprep.subr.bf16.mxu1 %v2921_v59  ;;  %v3021_v59 = vld [vmem:[#allocation4 + $0x1e0] ss:$8 sps:$4 sm:$0xff]  }
  0xca   :  { %1434 = vmatpush2.bf16.msra.mxu0 %v2916_v60  ;;  %v2987_v60 = vld [vmem:[#allocation4 + $0xa4] ss:$8 sps:$4 sm:$0xff]  }
  0xcb   :  { %1475 = vmatpush2.bf16.msra.mxu1 %v2919_v61  ;;  %1435 = vmatprep.subr.bf16.mxu0 %v2924_v62  ;;  %v3026_v61 = vld [vmem:[#allocation4 + $0x1d4] ss:$8 sps:$4 sm:$0xff]   ;;  %v2985_v62 = vld [vmem:[#allocation4 + $0xa0] ss:$8 sps:$4 sm:$0xff]  }
  0xcc   :  { %1476 = vmatprep.subr.bf16.mxu1 %v2927_v63  ;;  %v3024_v63 = vld [vmem:[#allocation4 + $0x1d0] ss:$8 sps:$4 sm:$0xff]  }
  0xce   :  { %1436 = vmatpush2.bf16.msra.mxu0 %v2922_v0  ;;  %v2990_v0 = vld [vmem:[#allocation4 + $0x94] ss:$8 sps:$4 sm:$0xff]  }
  0xcf   :  { %1477 = vmatpush2.bf16.msra.mxu1 %v2925_v1  ;;  %1437 = vmatprep.subr.bf16.mxu0 %v2930_v2  ;;  %v3029_v1 = vld [vmem:[#allocation4 + $0x1c4] ss:$8 sps:$4 sm:$0xff]   ;;  %v2988_v2 = vld [vmem:[#allocation4 + $0x90] ss:$8 sps:$4 sm:$0xff]  }
  0xd0   :  { %1478 = vmatprep.subr.bf16.mxu1 %v2933_v3  ;;  %v3027_v3 = vld [vmem:[#allocation4 + $0x1c0] ss:$8 sps:$4 sm:$0xff]  }
  0xd2   :  { %1438 = vmatpush2.bf16.msra.mxu0 %v2928_v4  ;;  %v2993_v4 = vld [vmem:[#allocation4 + $0x84] ss:$8 sps:$4 sm:$0xff]  }
  0xd3   :  { %1479 = vmatpush2.bf16.msra.mxu1 %v2931_v5  ;;  %1439 = vmatprep.subr.bf16.mxu0 %v2936_v6  ;;  %v3032_v5 = vld [vmem:[#allocation4 + $0x1b4] ss:$8 sps:$4 sm:$0xff]   ;;  %v2991_v6 = vld [vmem:[#allocation4 + $0x80] ss:$8 sps:$4 sm:$0xff]  }
  0xd4   :  { %1480 = vmatprep.subr.bf16.mxu1 %v2939_v7  ;;  %v3030_v7 = vld [vmem:[#allocation4 + $0x1b0] ss:$8 sps:$4 sm:$0xff]  }
  0xd6   :  { %1440 = vmatpush2.bf16.msra.mxu0 %v2934_v10  ;;  %v3035_v10 = vld [vmem:[#allocation4 + $0x1a4] ss:$8 sps:$4 sm:$0xff]  }
  0xd7   :  { %1481 = vmatpush2.bf16.msra.mxu1 %v2937_v11  ;;  %1441 = vmatprep.subr.bf16.mxu0 %v2942_v12  ;;  %v3033_v11 = vld [vmem:[#allocation4 + $0x1a0] ss:$8 sps:$4 sm:$0xff]  }
  0xd8   :  { %1482 = vmatprep.subr.bf16.mxu1 %v2945_v13 }
  0xda   :  { %1442 = vmatpush2.bf16.msra.mxu0 %v2940_v14 }
  0xdb   :  { %1483 = vmatpush2.bf16.msra.mxu1 %v2943_v15  ;;  %1897 = vmatprep.subr.bf16.mxu0 %v2948_v17  ;;  %v3038_v17 = vld [vmem:[#allocation4 + $0x194] ss:$8 sps:$4 sm:$0xff]  }
  0xdc   :  { %1938 = vmatprep.subr.bf16.mxu1 %v2996_v27 }
  0xdd   :  { %1444 = vmatmul.mubr.bf16.vlgmr.msra.gmra.mxu0 %v3217_v9  ;;  %v2958_v9 = vld [vmem:[#allocation4 + $0x30] ss:$8 sps:$4 sm:$0xff]  }
  0xde   :  { %1485 = vmatmul.mubr.bf16.vlgmr.msra.gmra.mxu1 %v3231_v16  ;;  %1898 = vmatpush1.bf16.msra.mxu0 %v2946_v18  ;;  %v2997_v16 = vld [vmem:[#allocation4 + $0x160] ss:$8 sps:$4 sm:$0xff]   ;;  %v3036_v18 = vld [vmem:[#allocation4 + $0x190] ss:$8 sps:$4 sm:$0xff]  }
  0xdf   :  { %1899 = vmatprep.subr.bf16.mxu0 %v2951_v19  ;;  %1939 = vmatpush1.bf16.msra.mxu1 %v2994_v26 }
  0xe0   :  { %1940 = vmatprep.subr.bf16.mxu1 %v2999_v28  ;;  %v265_v28 = vld [vmem:[%s3365_s5] sm:$0xf] }
  0xe2   :  { %1900 = vmatpush1.bf16.msra.mxu0 %v2949_v20 }
  0xe3   :  { %1901 = vmatprep.subr.bf16.mxu0 %v2954_v21  ;;  %1941 = vmatpush1.bf16.msra.mxu1 %v2997_v16 }
  0xe4   :  { %1942 = vmatprep.subr.bf16.mxu1 %v3002_v29 }
  0xe6   :  { %1902 = vmatpush1.bf16.msra.mxu0 %v2952_v22 }
  0xe7   :  { %1903 = vmatprep.subr.bf16.mxu0 %v2957_v23  ;;  %1943 = vmatpush1.bf16.msra.mxu1 %v3000_v31  ;;  %v3041_v23 = vld [vmem:[#allocation4 + $0x184] ss:$8 sps:$4 sm:$0xff]  }
  0xe8   :  { %1944 = vmatprep.subr.bf16.mxu1 %v3005_v52 }
  0xea   :  { %1904 = vmatpush1.bf16.msra.mxu0 %v2955_v24  ;;  %v3039_v24 = vld [vmem:[#allocation4 + $0x180] ss:$8 sps:$4 sm:$0xff]  }
  0xeb   :  { %1905 = vmatprep.subr.bf16.mxu0 %v2960_v25  ;;  %1945 = vmatpush1.bf16.msra.mxu1 %v3003_v34  ;;  %v267_v25 = vlaneseq }
  0xec   :  { %1946 = vmatprep.subr.bf16.mxu1 %v3008_v36 }
  0xed   :  { %v268_v26 = vshrl.u32 %v267_v25, 7  ;;  %v3060_v25 = vld [vmem:[%s3364_s4 + $0x74] ss:$8 sps:$4 sm:$0xff]  }
  0xee   :  { %1906 = vmatpush1.bf16.msra.mxu0 %v2958_v9 }
  0xef   :  { %1907 = vmatprep.subr.bf16.mxu0 %v2963_v8  ;;  %1947 = vmatpush1.bf16.msra.mxu1 %v3006_v38  ;;  %v3239_v27 = vsub.s32 0, %v268_v26  ;;  %v3244_v9 = vsub.s32 1, %v268_v26 }
  0xf0   :  { %1948 = vmatprep.subr.bf16.mxu1 %v3011_v40 }
  0xf1   :  { %v270_v16 = vrot.slane %v265_v28, %v3239_v27  ;;  %v274_v8 = vrot.slane %v265_v28, %v3244_v9 }
  0xf2   :  { %1908 = vmatpush1.bf16.msra.mxu0 %v2961_v30 }
  0xf3   :  { %1909 = vmatprep.subr.bf16.mxu0 %v2966_v32  ;;  %1949 = vmatpush1.bf16.msra.mxu1 %v3009_v42 }
  0xf4   :  { %1950 = vmatprep.subr.bf16.mxu1 %v3014_v44 }
  0xf6   :  { %1910 = vmatpush1.bf16.msra.mxu0 %v2964_v33 }
  0xf7   :  { %1911 = vmatprep.subr.bf16.mxu0 %v2969_v35  ;;  %1951 = vmatpush1.bf16.msra.mxu1 %v3012_v46  ;;  %v277_v46 = vsub.s32 2, %v268_v26 }
  0xf8   :  { %1952 = vmatprep.subr.bf16.mxu1 %v3017_v48 }
  0xf9   :  { %v278_v48 = vrot.slane %v265_v28, %v277_v46 }
  0xfa   :  { %1912 = vmatpush1.bf16.msra.mxu0 %v2967_v37 }
  0xfb   :  { %1913 = vmatprep.subr.bf16.mxu0 %v2972_v39  ;;  %1953 = vmatpush1.bf16.msra.mxu1 %v3015_v50 }
  0xfc   :  { %1954 = vmatprep.subr.bf16.mxu1 %v3020_v53 }
  0xfe   :  { %1914 = vmatpush2.bf16.msra.mxu0 %v2970_v41 }
  0xff   :  { %1915 = vmatprep.subr.bf16.mxu0 %v2975_v43  ;;  %1955 = vmatpush2.bf16.msra.mxu1 %v3018_v55 }
 0x100   :  { %1956 = vmatprep.subr.bf16.mxu1 %v3023_v57 }
 0x102   :  { %1916 = vmatpush2.bf16.msra.mxu0 %v2973_v45 }
 0x103   :  { %1917 = vmatprep.subr.bf16.mxu0 %v2978_v47  ;;  %1957 = vmatpush2.bf16.msra.mxu1 %v3021_v59  ;;  %v281_v47 = vsub.s32 3, %v268_v26  ;;  %v3063_v26 = vld [vmem:[%s3364_s4 + $0x64] ss:$8 sps:$4 sm:$0xff]  }
 0x104   :  { %1958 = vmatprep.subr.bf16.mxu1 %v3026_v61 }
 0x106   :  { %1918 = vmatpush2.bf16.msra.mxu0 %v2976_v49  ;;  %v282_v49 = vrot.slane %v265_v28, %v281_v47  ;;  %v3061_v28 = vld [vmem:[%s3364_s4 + $0x60] ss:$8 sps:$4 sm:$0xff]  }
 0x107   :  { %1919 = vmatprep.subr.bf16.mxu0 %v2981_v51  ;;  %1959 = vmatpush2.bf16.msra.mxu1 %v3024_v63 }
 0x108   :  { %1960 = vmatprep.subr.bf16.mxu1 %v3029_v1 }
 0x10a   :  { %1920 = vmatpush2.bf16.msra.mxu0 %v2979_v54 }
 0x10b   :  { %1921 = vmatprep.subr.bf16.mxu0 %v2984_v56  ;;  %1961 = vmatpush2.bf16.msra.mxu1 %v3027_v3 }
 0x10c   :  { %1962 = vmatprep.subr.bf16.mxu1 %v3032_v5  ;;  %v3042_v5 = vld [vmem:[%s3363_s3 + $0x78] sm:$0xff]  }
 0x10e   :  { %1922 = vmatpush2.bf16.msra.mxu0 %v2982_v58 }
 0x10f   :  { %1923 = vmatprep.subr.bf16.mxu0 %v2987_v60  ;;  %1963 = vmatpush2.bf16.msra.mxu1 %v3030_v7  ;;  %v3044_v7 = vld [vmem:[%s3363_s3 + $0x70] sm:$0xff]  }
 0x110   :  { %1964 = vmatprep.subr.bf16.mxu1 %v3035_v10  ;;  %v3045_v10 = vld [vmem:[%s3363_s3 + $0x30] sm:$0xff]  }
 0x112   :  { %1924 = vmatpush2.bf16.msra.mxu0 %v2985_v62 }
 0x113   :  { %1925 = vmatprep.subr.bf16.mxu0 %v2990_v0  ;;  %1965 = vmatpush2.bf16.msra.mxu1 %v3033_v11  ;;  %v3046_v11 = vld [vmem:[%s3363_s3 + $0x68] sm:$0xff]  }
 0x114   :  { %1966 = vmatprep.subr.bf16.mxu1 %v3038_v17  ;;  %v3051_v17 = vld [vmem:[%s3363_s3 + $0x18] sm:$0xff]  }
 0x116   :  { %1926 = vmatpush2.bf16.msra.mxu0 %v2988_v2 }
 0x117   :  { %1927 = vmatprep.subr.bf16.mxu0 %v2993_v4  ;;  %1967 = vmatpush2.bf16.msra.mxu1 %v3036_v18  ;;  %v3052_v18 = vld [vmem:[%s3363_s3 + $0x50] sm:$0xff]  }
 0x118   :  { %1968 = vmatprep.subr.bf16.mxu1 %v3041_v23  ;;  %v3057_v23 = vld [vmem:[%s3363_s3] sm:$0xff]  }
 0x11a   :  { %1928 = vmatpush2.bf16.msra.mxu0 %v2991_v6  ;;  %v3043_v6 = vld [vmem:[%s3363_s3 + $0x38] sm:$0xff]  }
 0x11b   :  { %1969 = vmatpush2.bf16.msra.mxu1 %v3039_v24  ;;  %2629 = vmatprep.subr.bf16.mxu0 %v3042_v5  ;;  %v3058_v24 = vld [vmem:[%s3364_s4 + $0x70] ss:$8 sps:$4 sm:$0xff]  }
 0x11c   :  { %2268 = vmatprep.subr.bf16.mxu1 %v3060_v25 }
 0x11d   :  { %v1281_v12 = vpop.f32.mrf.mxu0 }
 0x11e   :  { %v1322_v13 = vpop.f32.mrf.mxu1  ;;  %v1282_v29 = vadd.f32 %v1281_v12, %v270_v16  ;;  %v3047_v12 = vld [vmem:[%s3363_s3 + $0x28] sm:$0xff]   ;;  %v3066_v16 = vld [vmem:[%s3364_s4 + $0x54] ss:$8 sps:$4 sm:$0xff]  }
 0x11f   :  { %v1283_v14 = vpop.f32.mrf.mxu0 }
 0x120   :  { %v1324_v15 = vpop.f32.mrf.mxu1  ;;  %v1284_v30 = vadd.f32 %v1283_v14, %v274_v8  ;;  %v1323_v31 = vadd.f32 %v1322_v13, %v1282_v29  ;;  %v3048_v13 = vld [vmem:[%s3363_s3 + $0x60] sm:$0xff]   ;;  %v3064_v8 = vld [vmem:[%s3364_s4 + $0x50] ss:$8 sps:$4 sm:$0xff]  }
 0x121   :  { %v1285_v19 = vpop.f32.mrf.mxu0  ;;  %v3049_v14 = vld [vmem:[%s3363_s3 + $0x20] sm:$0xff]  }
 0x122   :  { %v1326_v20 = vpop.f32.mrf.mxu1  ;;  %v1325_v33 = vadd.f32 %v1324_v15, %v1284_v30  ;;  %v3050_v15 = vld [vmem:[%s3363_s3 + $0x58] sm:$0xff]   ;;  %v3053_v19 = vld [vmem:[%s3363_s3 + $0x10] sm:$0xff]   ;;  %v3069_v29 = vld [vmem:[%s3364_s4 + $0x44] ss:$8 sps:$4 sm:$0xff]  }
 0x123   :  { %v1286_v21 = vpop.f32.mrf.mxu0  ;;  %v3054_v20 = vld [vmem:[%s3363_s3 + $0x48] sm:$0xff]  }
 0x124   :  { %v1327_v22 = vpop.f32.mrf.mxu1  ;;  %v3055_v21 = vld [vmem:[%s3363_s3 + $0x8] sm:$0xff]  }
 0x125   :  { %v3056_v22 = vld [vmem:[%s3363_s3 + $0x40] sm:$0xff]  }
 0x126   :  { %v3067_v30 = vld [vmem:[%s3364_s4 + $0x40] ss:$8 sps:$4 sm:$0xff]  }
 0x15d   :  { %v1363_v32 = vpop.f32.mrf.mxu0 }
 0x15e   :  { %v1404_v52 = vpop.f32.mrf.mxu1  ;;  %v1364_v34 = vadd.f32 %v1363_v32, %v1323_v31  ;;  %v3072_v31 = vld [vmem:[%s3364_s4 + $0x34] ss:$8 sps:$4 sm:$0xff]   ;;  %v3070_v32 = vld [vmem:[%s3364_s4 + $0x30] ss:$8 sps:$4 sm:$0xff]  }
 0x15f   :  { %v1365_v35 = vpop.f32.mrf.mxu0  ;;  %v1405_v50 = vadd.f32 %v1404_v52, %v278_v48  ;;  %v3075_v52 = vld [vmem:[%s3364_s4 + $0x24] ss:$8 sps:$4 sm:$0xff]  }
 0x160   :  { %v1406_v36 = vpop.f32.mrf.mxu1  ;;  %v1366_v37 = vadd.f32 %v1365_v35, %v1325_v33  ;;  %v1493_v38 = vmax.f32 %v1364_v34, 0.0  ;;  %v3073_v33 = vld [vmem:[%s3364_s4 + $0x20] ss:$8 sps:$4 sm:$0xff]  }
 0x161   :  { %v1367_v39 = vpop.f32.mrf.mxu0  ;;  %v1407_v54 = vadd.f32 %v1406_v36, %v282_v49 }
 0x162   :  { %v1408_v40 = vpop.f32.mrf.mxu1  ;;  %v1494_v41 = vmax.f32 %v1366_v37, 0.0  ;;  %v1497_v45 = vpack.c.bf16 %v1493_v38, %v1493_v38  ;;  %v1565_v38 = vld [vmem:[%s3366_s6] sm:$0x3] }
 0x163   :  { %v1368_v42 = vpop.f32.mrf.mxu0  ;;  %v1570_v39 = vrot.slane %v1565_v38, %v3239_v27  ;;  %v1574_v40 = vrot.slane %v1565_v38, %v3244_v9 }
 0x164   :  { %v1409_v43 = vpop.f32.mrf.mxu1  ;;  %v1498_v44 = vpack.c.bf16 %v1494_v41, %v1494_v41 }
 0x166   :  { %1929 = vmatprep.mubr.bf16.mxu0 %v1498_v44 }
 0x167   :  { %1930 = vmatmul.mubr.bf16.vlgmr.msra.gmra.mxu0 %v1497_v45 }
 0x168   :  { %2630 = vmatpush3.bf16.msra.mxu0 %v3043_v6 }
 0x169   :  { %2631 = vmatprep.subr.bf16.mxu0 %v3044_v7 }
 0x16c   :  { %2632 = vmatpush3.bf16.msra.mxu0 %v3045_v10 }
 0x16d   :  { %2633 = vmatprep.subr.bf16.mxu0 %v3046_v11 }
 0x170   :  { %2634 = vmatpush3.bf16.msra.mxu0 %v3047_v12 }
 0x171   :  { %2635 = vmatprep.subr.bf16.mxu0 %v3048_v13 }
 0x174   :  { %2636 = vmatpush3.bf16.msra.mxu0 %v3049_v14 }
 0x175   :  { %2637 = vmatprep.subr.bf16.mxu0 %v3050_v15 }
 0x178   :  { %2638 = vmatpush3.bf16.msra.mxu0 %v3051_v17 }
 0x179   :  { %2639 = vmatprep.subr.bf16.mxu0 %v3052_v18 }
 0x17c   :  { %2640 = vmatpush3.bf16.msra.mxu0 %v3053_v19 }
 0x17d   :  { %2641 = vmatprep.subr.bf16.mxu0 %v3054_v20 }
 0x180   :  { %2642 = vmatpush3.bf16.msra.mxu0 %v3055_v21 }
 0x181   :  { %2643 = vmatprep.subr.bf16.mxu0 %v3056_v22 }
 0x184   :  { %2644 = vmatpush3.bf16.msra.mxu0 %v3057_v23 }
 0x19d   :  { %v1445_v51 = vpop.f32.mrf.mxu0 }
 0x19e   :  { %v1486_v53 = vpop.f32.mrf.mxu1  ;;  %v1446_v55 = vadd.f32 %v1445_v51, %v1405_v50 }
 0x19f   :  { %v1447_v56 = vpop.f32.mrf.mxu0 }
 0x1a0   :  { %v1488_v57 = vpop.f32.mrf.mxu1  ;;  %v1487_v58 = vadd.f32 %v1486_v53, %v1446_v55  ;;  %v1448_v59 = vadd.f32 %v1447_v56, %v1407_v54  ;;  %v3078_v54 = vld [vmem:[%s3364_s4 + $0x14] ss:$8 sps:$4 sm:$0xff]   ;;  %v3076_v55 = vld [vmem:[%s3364_s4 + $0x10] ss:$8 sps:$4 sm:$0xff]   ;;  %v3081_v56 = vld [vmem:[%s3364_s4 + $0x4] ss:$8 sps:$4 sm:$0xff]  }
 0x1a1   :  { %v1449_v60 = vpop.f32.mrf.mxu0 }
 0x1a2   :  { %v1490_v61 = vpop.f32.mrf.mxu1  ;;  %v1489_v62 = vadd.f32 %v1488_v57, %v1448_v59  ;;  %v1495_v63 = vmax.f32 %v1487_v58, 0.0  ;;  %v3079_v57 = vld [vmem:[%s3364_s4] ss:$8 sps:$4 sm:$0xff]   ;;  %v3140_v58 = vmov 0  }
 0x1a3   :  { %v1450_v0 = vpop.f32.mrf.mxu0  ;;  %v2592_v60 = vld [vmem:[%s3367_s7] ss:$0 sm:$0xff] }
 0x1a4   :  { %v1491_v1 = vpop.f32.mrf.mxu1  ;;  %v1496_v2 = vmax.f32 %v1489_v62, 0.0  ;;  %v1499_v4 = vpack.c.bf16 %v1495_v63, %v1495_v63 }
 0x1a6   :  { %v1500_v3 = vpack.c.bf16 %v1496_v2, %v1496_v2 }
 0x1a8   :  { %1970 = vmatprep.mubr.bf16.mxu1 %v1500_v3 }
 0x1a9   :  { %1971 = vmatmul.mubr.bf16.vlgmr.msra.gmra.mxu1 %v1499_v4  ;;  %v2176_v4 = vld [vmem:[%s3368_s8] sm:$0x3] }
 0x1aa   :  { %2269 = vmatpush1.bf16.msra.mxu1 %v3058_v24  ;;  %2300 = vmatprep.mubr.bf16.mxu1 %v3140_v58  ;;  %v2181_v5 = vrot.slane %v2176_v4, %v3239_v27  ;;  %v2185_v6 = vrot.slane %v2176_v4, %v3244_v9 }
 0x1ab   :  { %2270 = vmatprep.subr.bf16.mxu1 %v3063_v26 }
 0x1ae   :  { %2271 = vmatpush1.bf16.msra.mxu1 %v3061_v28 }
 0x1af   :  { %2272 = vmatprep.subr.bf16.mxu1 %v3066_v16 }
 0x1b2   :  { %2273 = vmatpush1.bf16.msra.mxu1 %v3064_v8 }
 0x1b3   :  { %2274 = vmatprep.subr.bf16.mxu1 %v3069_v29 }
 0x1b6   :  { %2275 = vmatpush1.bf16.msra.mxu1 %v3067_v30 }
 0x1b7   :  { %2276 = vmatprep.subr.bf16.mxu1 %v3072_v31 }
 0x1ba   :  { %2277 = vmatpush1.bf16.msra.mxu1 %v3070_v32 }
 0x1bb   :  { %2278 = vmatprep.subr.bf16.mxu1 %v3075_v52 }
 0x1be   :  { %2279 = vmatpush1.bf16.msra.mxu1 %v3073_v33 }
 0x1bf   :  { %2280 = vmatprep.subr.bf16.mxu1 %v3078_v54 }
 0x1c2   :  { %2281 = vmatpush1.bf16.msra.mxu1 %v3076_v55 }
 0x1c3   :  { %2282 = vmatprep.subr.bf16.mxu1 %v3081_v56 }
 0x1c6   :  { %2283 = vmatpush1.bf16.msra.mxu1 %v3079_v57 }
 0x227   :  { %v1931_v34 = vpop.f32.mrf.mxu0 }
 0x228   :  { %v1932_v41 = vadd.f32 %v1931_v34, %v1570_v39 }
 0x229   :  { %v1933_v35 = vpop.f32.mrf.mxu0 }
 0x22a   :  { %v1934_v43 = vadd.f32 %v1933_v35, %v1574_v40 }
 0x22b   :  { %v1935_v36 = vpop.f32.mrf.mxu0 }
 0x22d   :  { %v1936_v37 = vpop.f32.mrf.mxu0 }
 0x269   :  { %v1972_v42 = vpop.f32.mrf.mxu1 }
 0x26a   :  { %v1973_v44 = vadd.f32 %v1972_v42, %v1932_v41 }
 0x26b   :  { %v1974_v45 = vpop.f32.mrf.mxu1 }
 0x26c   :  { %v1975_v46 = vadd.f32 %v1974_v45, %v1934_v43  ;;  %v1979_v47 = vmax.f32 %v1973_v44, 0.0 }
 0x26d   :  { %v1976_v48 = vpop.f32.mrf.mxu1 }
 0x26e   :  { %v1980_v49 = vmax.f32 %v1975_v46, 0.0  ;;  %v1981_v53 = vpack.c.bf16 %v1979_v47, %v1979_v47 }
 0x26f   :  { %v1977_v50 = vpop.f32.mrf.mxu1 }
 0x270   :  { %v1982_v51 = vpack.c.bf16 %v1980_v49, %v1980_v49 }
 0x272   :  { %2150 = vmatprep.mubr.bf16.mxu0 %v1982_v51 }
 0x273   :  { %2151 = vmatmul.mubr.bf16.vlgmr.msra.gmra.mxu0 %v1981_v53 }
 0x333   :  { %v2645_v59 = vpop.f32.mrf.mxu0 }
 0x335   :  { %v2646_v61 = vpop.f32.mrf.mxu0 }
 0x336   :  { %v2647_v62 = vadd.f32 %v2646_v61, %v2645_v59 }
 0x337   :  { %v2648_v63 = vpop.f32.mrf.mxu0 }
 0x338   :  { %v2153_v0 = vadd.f32 %v2647_v62, %v2592_v60 }
 0x339   :  { %v2649_v1 = vpop.f32.mrf.mxu0 }
 0x33a   :  { %v2158_v2 = vmax.f32 %v2153_v0, 0.0 }
 0x33c   :  { %v2159_v3 = vpack.c.bf16 %v2158_v2, %v2158_v2 }
 0x33e   :  { %2301 = vmatmul.mubr.bf16.vlgmr.msra.gmra.mxu1 %v2159_v3 }
 0x3fe   :  { %v2302_v7 = vpop.f32.mrf.mxu1 }
 0x3ff   :  { %v2303_v10 = vadd.f32 %v2302_v7, %v2181_v5 }
 0x400   :  { %v2304_v11 = vpop.f32.mrf.mxu1 }
 0x401   :  { %v2625_v12 = vmul.f32 -1.442695, %v2303_v10  ;;  %v2305_v13 = vadd.f32 %v2304_v11, %v2185_v6 }
 0x402   :  { %v2306_v14 = vpop.f32.mrf.mxu1 }
 0x403   :  { %3082 = vpow2.f32 %v2625_v12  ;;  %v2626_v15 = vmul.f32 -1.442695, %v2305_v13 }
 0x404   :  { %v2307_v17 = vpop.f32.mrf.mxu1 }
 0x405   :  { %3084 = vpow2.f32 %v2626_v15 }
 0x410   :  { %v3083_v18 = vpop.eup %3082 }
 0x411   :  { %v2315_v19 = vadd.f32 1.0, %v3083_v18 }
 0x412   :  { %v3085_v20 = vpop.eup %3084 }
 0x413   :  { %v2316_v21 = vadd.f32 1.0, %v3085_v20  ;;  %3086 = vrcp.f32 %v2315_v19 }
 0x415   :  { %3088 = vrcp.f32 %v2316_v21 }
 0x420   :  { %v3087_v22 = vpop.eup %3086 }
 0x422   :  { %v3089_v27 = vpop.eup %3088 }
 0x423   :  { %v2628_v23 = vpack.c.bf16 %v3089_v27, %v3087_v22 }
 0x425   :  { %2329 = vst [vmem:[%s3369_s9] sm:$0xff] %v2628_v23 }
 0x426   :  { %2334 = vsyncpa [#allocation3], 1 }
 0x427   :  { %2335 = vsyncpa [#allocation5], 1 }

</bundles_post_ra>
